<compile_context>
chip_gen: v5e
topology: v5e:2x2
jax: 0.10.0
libtpu: 0.0.40
codegen_flags: <defaults>
</compile_context>

<pallas_src>
import jax
import jax.numpy as jnp
from jax import lax
from jax.experimental import pallas as pl
from jax.experimental.pallas import tpu as pltpu


def _round_up(n, m):
    return ((n + m - 1) // m) * m


# ----------------------------------------------------------------------------
# Fused kernel: prologue matmul -> LSTM recurrence -> output projection.
# ----------------------------------------------------------------------------
def fused_model6_kernel(x_ref, wcomb_ref, bcomb_ref, whh_ref, h0_ref, c0_ref,
                        wout_ref, bout_ref, o_ref, gx_s, hseq_s):
    T, Bp, four_h = gx_s.shape
    H = hseq_s.shape[2]

    # --- Prologue: folded (linear1 o linear2 o W_ih) over all T*Bp rows ------
    gates_x = jnp.dot(x_ref[...], wcomb_ref[...],
                      preferred_element_type=jnp.float32) + bcomb_ref[...]
    gx_s[...] = gates_x.reshape(T, Bp, four_h)

    # --- Recurrence: h/c in loop-carry vregs, whh hoisted and VMEM-resident --
    whh = whh_ref[...]                                   # (H, 4H), f32 or bf16
    h0 = jnp.broadcast_to(h0_ref[...], (Bp, H))
    c0 = jnp.broadcast_to(c0_ref[...], (Bp, H))

    def step(t, carry):
        h, c = carry
        gates = gx_s[t] + jnp.dot(h.astype(whh.dtype), whh,
                                  preferred_element_type=jnp.float32)
        # nn.LSTM gate order (i, f, g, o): contiguous sigmoid on [0:2H],
        # tanh on g, sigmoid on o.  All elementwise math stays f32.
        sig_if = jax.nn.sigmoid(gates[:, :2 * H])
        g_g = jnp.tanh(gates[:, 2 * H:3 * H])
        o_g = jax.nn.sigmoid(gates[:, 3 * H:])
        c_new = sig_if[:, H:] * c + sig_if[:, :H] * g_g
        h_new = o_g * jnp.tanh(c_new)
        hseq_s[t] = h_new
        return (h_new, c_new)

    lax.fori_loop(0, T, step, (h0, c0), unroll=True if T <= 32 else 8)

    # --- Epilogue: output projection on the VMEM-resident h sequence ---------
    h_flat = hseq_s[...].reshape(T * Bp, H)
    o_ref[...] = jnp.dot(h_flat, wout_ref[...],
                         preferred_element_type=jnp.float32) + bout_ref[...]


# ----------------------------------------------------------------------------
# Wrapper
# ----------------------------------------------------------------------------
def model6_forward(x, params, *, recurrence_mxu_dtype=jnp.float32):
    """x: (B, T, D) float32 -> logits (B, T, O) float32."""
    B, T, D = x.shape
    H = params["w_hh"].shape[1]          # w_hh: (4H, H)
    O = params["w_out"].shape[0]         # w_out: (O, H)
    four_h = 4 * H
    f32 = jnp.float32

    Bp = _round_up(B, 8)                 # pad batch to sublane width
    Op = _round_up(O, 128)               # pad output to lane width
    n_rows = T * Bp

    # time-major, batch-padded activations, flattened to (T*Bp, D)
    x_tbd = jnp.transpose(x, (1, 0, 2)).astype(f32)        # (T, B, D)
    if Bp != B:
        x_tbd = jnp.pad(x_tbd, ((0, 0), (0, Bp - B), (0, 0)))
    x_flat = x_tbd.reshape(n_rows, D)

    # Algebraic fold: linear1 -> linear2 -> W_ih collapse into one weight/bias
    # (exact: no nonlinearity between them).
    w1_t = jnp.transpose(params["w1"]).astype(f32)          # (D, H)
    w2_t = jnp.transpose(params["w2"]).astype(f32)          # (H, H)
    wih_t = jnp.transpose(params["w_ih"]).astype(f32)       # (H, 4H)
    w_comb = w1_t @ w2_t @ wih_t                             # (D, 4H)
    b_comb = (params["b1"].astype(f32) @ w2_t @ wih_t
              + params["b2"].astype(f32) @ wih_t
              + params["b_ih"].astype(f32)
              + params["b_hh"].astype(f32)).reshape(1, four_h)

    # Recurrence weight: optionally bf16 (MXU operand only; accum stays f32).
    whh_t = jnp.transpose(params["w_hh"]).astype(recurrence_mxu_dtype)  # (H, 4H)
    h0 = params["h0"].reshape(1, H).astype(f32)
    c0 = params["c0"].reshape(1, H).astype(f32)

    # Output projection padded to a lane-dense 128-wide slab.
    wout_p = jnp.zeros((H, Op), f32).at[:, :O].set(
        jnp.transpose(params["w_out"]).astype(f32))
    bout_p = jnp.zeros((1, Op), f32).at[:, :O].set(
        params["b_out"].reshape(1, O).astype(f32))

    logits_p = pl.pallas_call(
        fused_model6_kernel,
        out_shape=jax.ShapeDtypeStruct((n_rows, Op), f32),
        scratch_shapes=[pltpu.VMEM((T, Bp, four_h), f32),    # gates_x
                        pltpu.VMEM((T, Bp, H), f32)],        # h sequence
    )(x_flat, w_comb, b_comb, whh_t, h0, c0, wout_p, bout_p)

    logits = logits_p.reshape(T, Bp, Op)[:, :B, :O]           # drop padding
    return jnp.transpose(logits, (1, 0, 2))                   # (B, T, O)


# ----------------------------------------------------------------------------
# Pure-JAX reference (for correctness check)
# ----------------------------------------------------------------------------
def model6_reference(x, params):
    B, T, D = x.shape
    H = params["w_hh"].shape[1]

    h1 = x @ params["w1"].T + params["b1"]
    h2 = h1 @ params["w2"].T + params["b2"]

    h = jnp.broadcast_to(params["h0"].reshape(1, H), (B, H))
    c = jnp.broadcast_to(params["c0"].reshape(1, H), (B, H))
    b = params["b_ih"] + params["b_hh"]

    def step(carry, x_t):
        h, c = carry
        g = x_t @ params["w_ih"].T + h @ params["w_hh"].T + b
        i_g = jax.nn.sigmoid(g[:, 0 * H:1 * H])
        f_g = jax.nn.sigmoid(g[:, 1 * H:2 * H])
        g_g = jnp.tanh(g[:, 2 * H:3 * H])
        o_g = jax.nn.sigmoid(g[:, 3 * H:4 * H])
        c = f_g * c + i_g * g_g
        h = o_g * jnp.tanh(c)
        return (h, c), h

    (_, _), h_seq = lax.scan(step, (h, c), jnp.transpose(h2, (1, 0, 2)))
    logits = h_seq @ params["w_out"].T + params["b_out"]      # (T, B, O)
    return jnp.transpose(logits, (1, 0, 2))


# ----------------------------------------------------------------------------
def init_params(key, input_size, hidden_size, output_size):
    D, H, O = input_size, hidden_size, output_size
    ks = jax.random.split(key, 12)
    u = lambda k, shape, lim: jax.random.uniform(k, shape, jnp.float32, -lim, lim)
    kd = 1.0 / jnp.sqrt(D)
    kh = 1.0 / jnp.sqrt(H)
    return {
        "w1": u(ks[0], (H, D), kd),
        "b1": u(ks[1], (H,), kd),
        "w2": u(ks[2], (H, H), kh),
        "b2": u(ks[3], (H,), kh),
        "w_ih": u(ks[4], (4 * H, H), kh),
        "w_hh": u(ks[5], (4 * H, H), kh),
        "b_ih": u(ks[6], (4 * H,), kh),
        "b_hh": u(ks[7], (4 * H,), kh),
        "h0": jax.random.uniform(ks[8], (1, 1, H), jnp.float32),  # torch.rand
        "c0": jax.random.uniform(ks[9], (1, 1, H), jnp.float32),
        "w_out": u(ks[10], (O, H), kh),
        "b_out": u(ks[11], (O,), kh),
    }


if __name__ == "__main__":
    B, T = 2, 8
    input_size, hidden_size, output_size = 32, 128, 4

    key = jax.random.PRNGKey(0)
    k_x, k_p = jax.random.split(key)
    x = jax.random.normal(k_x, (B, T, input_size), dtype=jnp.float32)
    params = init_params(k_p, input_size, hidden_size, output_size)

    ref = model6_reference(x, params)

    # Default (f32) path: exact-parity check against the reference.
    logits = jax.block_until_ready(jax.jit(model6_forward)(x, params))
    assert logits.shape == (B, T, output_size)
    assert jnp.allclose(logits, ref, atol=2e-3, rtol=2e-3), (
        float(jnp.max(jnp.abs(logits - ref))))

    # Reduced-precision recurrence path (v6e/v7x): bf16 MXU operands on the
    # serial h @ W_hh step, f32 everywhere else.  Loose tolerance by design.
    logits_bf16 = jax.block_until_ready(
        jax.jit(lambda xx, pp: model6_forward(
            xx, pp, recurrence_mxu_dtype=jnp.bfloat16))(x, params))
    assert bool(jnp.all(jnp.isfinite(logits_bf16)))
    assert float(jnp.max(jnp.abs(logits_bf16 - ref))) < 5e-2

    print("KERNEL_OK")
</pallas_src>

<mosaic_0001>
module attributes {stable_mosaic.version = 11 : i64} {
  func.func @fused_model6_kernel(%arg0: memref<64x32xf32, #tpu.memory_space<vmem>>, %arg1: memref<32x512xf32, #tpu.memory_space<vmem>>, %arg2: memref<1x512xf32, #tpu.memory_space<vmem>>, %arg3: memref<128x512xf32, #tpu.memory_space<vmem>>, %arg4: memref<1x128xf32, #tpu.memory_space<vmem>>, %arg5: memref<1x128xf32, #tpu.memory_space<vmem>>, %arg6: memref<128x128xf32, #tpu.memory_space<vmem>>, %arg7: memref<1x128xf32, #tpu.memory_space<vmem>>, %arg8: memref<64x128xf32, #tpu.memory_space<vmem>>, %arg9: memref<8x8x512xf32, #tpu.memory_space<vmem>>, %arg10: memref<8x8x128xf32, #tpu.memory_space<vmem>>) attributes {dimension_semantics = [], scalar_prefetch = 0 : i64, scratch_operands = 2 : i64, tpu.core_type = #tpu.core_type<tc>} {
    %c0 = arith.constant 0 : index
    %c0_0 = arith.constant 0 : index
    %0 = vector.load %arg0[%c0, %c0_0] : memref<64x32xf32, #tpu.memory_space<vmem>>, vector<64x32xf32>
    %c0_1 = arith.constant 0 : index
    %c0_2 = arith.constant 0 : index
    %1 = vector.load %arg1[%c0_1, %c0_2] : memref<32x512xf32, #tpu.memory_space<vmem>>, vector<32x512xf32>
    %cst = arith.constant dense<0.000000e+00> : vector<64x512xf32>
    %2 = tpu.matmul %0, %1, %cst {dimension_numbers = #tpu.dot_dimension_numbers<[1], [0], [0], [1], [0, 0, 1, 1], [], []>} : vector<64x32xf32>, vector<32x512xf32>, vector<64x512xf32> -> vector<64x512xf32>
    %c0_3 = arith.constant 0 : index
    %c0_4 = arith.constant 0 : index
    %3 = vector.load %arg2[%c0_3, %c0_4] : memref<1x512xf32, #tpu.memory_space<vmem>>, vector<1x512xf32>
    %4 = vector.broadcast %3 : vector<1x512xf32> to vector<64x512xf32>
    %5 = arith.addf %2, %4 : vector<64x512xf32>
    %6 = vector.shape_cast %5 : vector<64x512xf32> to vector<8x8x512xf32>
    %c0_5 = arith.constant 0 : index
    %c0_6 = arith.constant 0 : index
    %c0_7 = arith.constant 0 : index
    %7 = vector.load %arg9[%c0_5, %c0_6, %c0_7] : memref<8x8x512xf32, #tpu.memory_space<vmem>>, vector<8x8x512xf32>
    tpu.vector_store %arg9[%c0_5, %c0_6, %c0_7], %6 {strides = array<i32>} : memref<8x8x512xf32, #tpu.memory_space<vmem>>, vector<8x8x512xf32>,
    %c0_8 = arith.constant 0 : index
    %c0_9 = arith.constant 0 : index
    %8 = vector.load %arg3[%c0_8, %c0_9] : memref<128x512xf32, #tpu.memory_space<vmem>>, vector<128x512xf32>
    %c0_10 = arith.constant 0 : index
    %c0_11 = arith.constant 0 : index
    %9 = vector.load %arg4[%c0_10, %c0_11] : memref<1x128xf32, #tpu.memory_space<vmem>>, vector<1x128xf32>
    %10 = vector.shape_cast %9 : vector<1x128xf32> to vector<1x128xf32>
    %11 = vector.broadcast %10 : vector<1x128xf32> to vector<8x128xf32>
    %c0_12 = arith.constant 0 : index
    %c0_13 = arith.constant 0 : index
    %12 = vector.load %arg5[%c0_12, %c0_13] : memref<1x128xf32, #tpu.memory_space<vmem>>, vector<1x128xf32>
    %13 = vector.shape_cast %12 : vector<1x128xf32> to vector<1x128xf32>
    %14 = vector.broadcast %13 : vector<1x128xf32> to vector<8x128xf32>
    %c0_i32 = arith.constant 0 : i32
    %15 = arith.index_cast %c0_i32 : i32 to index
    %c0_14 = arith.constant 0 : index
    %c0_15 = arith.constant 0 : index
    %16 = vector.load %arg9[%15, %c0_14, %c0_15] : memref<8x8x512xf32, #tpu.memory_space<vmem>>, vector<1x8x512xf32>
    %17 = vector.shape_cast %16 : vector<1x8x512xf32> to vector<8x512xf32>
    %cst_16 = arith.constant dense<0.000000e+00> : vector<8x512xf32>
    %18 = tpu.matmul %11, %8, %cst_16 {dimension_numbers = #tpu.dot_dimension_numbers<[1], [0], [0], [1], [0, 0, 1, 1], [], []>} : vector<8x128xf32>, vector<128x512xf32>, vector<8x512xf32> -> vector<8x512xf32>
    %19 = arith.addf %17, %18 : vector<8x512xf32>
    %20 = vector.extract_strided_slice %19 {offsets = [0, 0], sizes = [8, 256], strides = [1, 1]} : vector<8x512xf32> to vector<8x256xf32>
    %21 = arith.negf %20 : vector<8x256xf32>
    %22 = math.exp %21 : vector<8x256xf32>
    %cst_17 = arith.constant 1.000000e+00 : f32
    %23 = vector.broadcast %cst_17 : f32 to vector<8x256xf32>
    %24 = arith.addf %23, %22 : vector<8x256xf32>
    %25 = arith.divf %23, %24 : vector<8x256xf32>
    %26 = vector.extract_strided_slice %19 {offsets = [0, 256], sizes = [8, 128], strides = [1, 1]} : vector<8x512xf32> to vector<8x128xf32>
    %27 = math.tanh %26 : vector<8x128xf32>
    %28 = vector.extract_strided_slice %19 {offsets = [0, 384], sizes = [8, 128], strides = [1, 1]} : vector<8x512xf32> to vector<8x128xf32>
    %29 = arith.negf %28 : vector<8x128xf32>
    %30 = math.exp %29 : vector<8x128xf32>
    %cst_18 = arith.constant 1.000000e+00 : f32
    %31 = vector.broadcast %cst_18 : f32 to vector<8x128xf32>
    %32 = arith.addf %31, %30 : vector<8x128xf32>
    %33 = arith.divf %31, %32 : vector<8x128xf32>
    %34 = vector.extract_strided_slice %25 {offsets = [0, 128], sizes = [8, 128], strides = [1, 1]} : vector<8x256xf32> to vector<8x128xf32>
    %35 = arith.mulf %34, %14 : vector<8x128xf32>
    %36 = vector.extract_strided_slice %25 {offsets = [0, 0], sizes = [8, 128], strides = [1, 1]} : vector<8x256xf32> to vector<8x128xf32>
    %37 = arith.mulf %36, %27 : vector<8x128xf32>
    %38 = arith.addf %35, %37 : vector<8x128xf32>
    %39 = math.tanh %38 : vector<8x128xf32>
    %40 = arith.mulf %33, %39 : vector<8x128xf32>
    %41 = arith.index_cast %c0_i32 : i32 to index
    %c0_19 = arith.constant 0 : index
    %c0_20 = arith.constant 0 : index
    %42 = vector.load %arg10[%41, %c0_19, %c0_20] : memref<8x8x128xf32, #tpu.memory_space<vmem>>, vector<1x8x128xf32>
    %43 = vector.shape_cast %42 : vector<1x8x128xf32> to vector<8x128xf32>
    %44 = vector.shape_cast %40 : vector<8x128xf32> to vector<1x8x128xf32>
    tpu.vector_store %arg10[%41, %c0_19, %c0_20], %44 {strides = array<i32>} : memref<8x8x128xf32, #tpu.memory_space<vmem>>, vector<1x8x128xf32>,
    %c1_i32 = arith.constant 1 : i32
    %45 = arith.index_cast %c1_i32 : i32 to index
    %c0_21 = arith.constant 0 : index
    %c0_22 = arith.constant 0 : index
    %46 = vector.load %arg9[%45, %c0_21, %c0_22] : memref<8x8x512xf32, #tpu.memory_space<vmem>>, vector<1x8x512xf32>
    %47 = vector.shape_cast %46 : vector<1x8x512xf32> to vector<8x512xf32>
    %cst_23 = arith.constant dense<0.000000e+00> : vector<8x512xf32>
    %48 = tpu.matmul %40, %8, %cst_23 {dimension_numbers = #tpu.dot_dimension_numbers<[1], [0], [0], [1], [0, 0, 1, 1], [], []>} : vector<8x128xf32>, vector<128x512xf32>, vector<8x512xf32> -> vector<8x512xf32>
    %49 = arith.addf %47, %48 : vector<8x512xf32>
    %50 = vector.extract_strided_slice %49 {offsets = [0, 0], sizes = [8, 256], strides = [1, 1]} : vector<8x512xf32> to vector<8x256xf32>
    %51 = arith.negf %50 : vector<8x256xf32>
    %52 = math.exp %51 : vector<8x256xf32>
    %cst_24 = arith.constant 1.000000e+00 : f32
    %53 = vector.broadcast %cst_24 : f32 to vector<8x256xf32>
    %54 = arith.addf %53, %52 : vector<8x256xf32>
    %55 = arith.divf %53, %54 : vector<8x256xf32>
    %56 = vector.extract_strided_slice %49 {offsets = [0, 256], sizes = [8, 128], strides = [1, 1]} : vector<8x512xf32> to vector<8x128xf32>
    %57 = math.tanh %56 : vector<8x128xf32>
    %58 = vector.extract_strided_slice %49 {offsets = [0, 384], sizes = [8, 128], strides = [1, 1]} : vector<8x512xf32> to vector<8x128xf32>
    %59 = arith.negf %58 : vector<8x128xf32>
    %60 = math.exp %59 : vector<8x128xf32>
    %cst_25 = arith.constant 1.000000e+00 : f32
    %61 = vector.broadcast %cst_25 : f32 to vector<8x128xf32>
    %62 = arith.addf %61, %60 : vector<8x128xf32>
    %63 = arith.divf %61, %62 : vector<8x128xf32>
    %64 = vector.extract_strided_slice %55 {offsets = [0, 128], sizes = [8, 128], strides = [1, 1]} : vector<8x256xf32> to vector<8x128xf32>
    %65 = arith.mulf %64, %38 : vector<8x128xf32>
    %66 = vector.extract_strided_slice %55 {offsets = [0, 0], sizes = [8, 128], strides = [1, 1]} : vector<8x256xf32> to vector<8x128xf32>
    %67 = arith.mulf %66, %57 : vector<8x128xf32>
    %68 = arith.addf %65, %67 : vector<8x128xf32>
    %69 = math.tanh %68 : vector<8x128xf32>
    %70 = arith.mulf %63, %69 : vector<8x128xf32>
    %71 = arith.index_cast %c1_i32 : i32 to index
    %c0_26 = arith.constant 0 : index
    %c0_27 = arith.constant 0 : index
    %72 = vector.load %arg10[%71, %c0_26, %c0_27] : memref<8x8x128xf32, #tpu.memory_space<vmem>>, vector<1x8x128xf32>
    %73 = vector.shape_cast %72 : vector<1x8x128xf32> to vector<8x128xf32>
    %74 = vector.shape_cast %70 : vector<8x128xf32> to vector<1x8x128xf32>
    tpu.vector_store %arg10[%71, %c0_26, %c0_27], %74 {strides = array<i32>} : memref<8x8x128xf32, #tpu.memory_space<vmem>>, vector<1x8x128xf32>,
    %c2_i32 = arith.constant 2 : i32
    %75 = arith.index_cast %c2_i32 : i32 to index
    %c0_28 = arith.constant 0 : index
    %c0_29 = arith.constant 0 : index
    %76 = vector.load %arg9[%75, %c0_28, %c0_29] : memref<8x8x512xf32, #tpu.memory_space<vmem>>, vector<1x8x512xf32>
    %77 = vector.shape_cast %76 : vector<1x8x512xf32> to vector<8x512xf32>
    %cst_30 = arith.constant dense<0.000000e+00> : vector<8x512xf32>
    %78 = tpu.matmul %70, %8, %cst_30 {dimension_numbers = #tpu.dot_dimension_numbers<[1], [0], [0], [1], [0, 0, 1, 1], [], []>} : vector<8x128xf32>, vector<128x512xf32>, vector<8x512xf32> -> vector<8x512xf32>
    %79 = arith.addf %77, %78 : vector<8x512xf32>
    %80 = vector.extract_strided_slice %79 {offsets = [0, 0], sizes = [8, 256], strides = [1, 1]} : vector<8x512xf32> to vector<8x256xf32>
    %81 = arith.negf %80 : vector<8x256xf32>
    %82 = math.exp %81 : vector<8x256xf32>
    %cst_31 = arith.constant 1.000000e+00 : f32
    %83 = vector.broadcast %cst_31 : f32 to vector<8x256xf32>
    %84 = arith.addf %83, %82 : vector<8x256xf32>
    %85 = arith.divf %83, %84 : vector<8x256xf32>
    %86 = vector.extract_strided_slice %79 {offsets = [0, 256], sizes = [8, 128], strides = [1, 1]} : vector<8x512xf32> to vector<8x128xf32>
    %87 = math.tanh %86 : vector<8x128xf32>
    %88 = vector.extract_strided_slice %79 {offsets = [0, 384], sizes = [8, 128], strides = [1, 1]} : vector<8x512xf32> to vector<8x128xf32>
    %89 = arith.negf %88 : vector<8x128xf32>
    %90 = math.exp %89 : vector<8x128xf32>
    %cst_32 = arith.constant 1.000000e+00 : f32
    %91 = vector.broadcast %cst_32 : f32 to vector<8x128xf32>
    %92 = arith.addf %91, %90 : vector<8x128xf32>
    %93 = arith.divf %91, %92 : vector<8x128xf32>
    %94 = vector.extract_strided_slice %85 {offsets = [0, 128], sizes = [8, 128], strides = [1, 1]} : vector<8x256xf32> to vector<8x128xf32>
    %95 = arith.mulf %94, %68 : vector<8x128xf32>
    %96 = vector.extract_strided_slice %85 {offsets = [0, 0], sizes = [8, 128], strides = [1, 1]} : vector<8x256xf32> to vector<8x128xf32>
    %97 = arith.mulf %96, %87 : vector<8x128xf32>
    %98 = arith.addf %95, %97 : vector<8x128xf32>
    %99 = math.tanh %98 : vector<8x128xf32>
    %100 = arith.mulf %93, %99 : vector<8x128xf32>
    %101 = arith.index_cast %c2_i32 : i32 to index
    %c0_33 = arith.constant 0 : index
    %c0_34 = arith.constant 0 : index
    %102 = vector.load %arg10[%101, %c0_33, %c0_34] : memref<8x8x128xf32, #tpu.memory_space<vmem>>, vector<1x8x128xf32>
    %103 = vector.shape_cast %102 : vector<1x8x128xf32> to vector<8x128xf32>
    %104 = vector.shape_cast %100 : vector<8x128xf32> to vector<1x8x128xf32>
    tpu.vector_store %arg10[%101, %c0_33, %c0_34], %104 {strides = array<i32>} : memref<8x8x128xf32, #tpu.memory_space<vmem>>, vector<1x8x128xf32>,
    %c3_i32 = arith.constant 3 : i32
    %105 = arith.index_cast %c3_i32 : i32 to index
    %c0_35 = arith.constant 0 : index
    %c0_36 = arith.constant 0 : index
    %106 = vector.load %arg9[%105, %c0_35, %c0_36] : memref<8x8x512xf32, #tpu.memory_space<vmem>>, vector<1x8x512xf32>
    %107 = vector.shape_cast %106 : vector<1x8x512xf32> to vector<8x512xf32>
    %cst_37 = arith.constant dense<0.000000e+00> : vector<8x512xf32>
    %108 = tpu.matmul %100, %8, %cst_37 {dimension_numbers = #tpu.dot_dimension_numbers<[1], [0], [0], [1], [0, 0, 1, 1], [], []>} : vector<8x128xf32>, vector<128x512xf32>, vector<8x512xf32> -> vector<8x512xf32>
    %109 = arith.addf %107, %108 : vector<8x512xf32>
    %110 = vector.extract_strided_slice %109 {offsets = [0, 0], sizes = [8, 256], strides = [1, 1]} : vector<8x512xf32> to vector<8x256xf32>
    %111 = arith.negf %110 : vector<8x256xf32>
    %112 = math.exp %111 : vector<8x256xf32>
    %cst_38 = arith.constant 1.000000e+00 : f32
    %113 = vector.broadcast %cst_38 : f32 to vector<8x256xf32>
    %114 = arith.addf %113, %112 : vector<8x256xf32>
    %115 = arith.divf %113, %114 : vector<8x256xf32>
    %116 = vector.extract_strided_slice %109 {offsets = [0, 256], sizes = [8, 128], strides = [1, 1]} : vector<8x512xf32> to vector<8x128xf32>
    %117 = math.tanh %116 : vector<8x128xf32>
    %118 = vector.extract_strided_slice %109 {offsets = [0, 384], sizes = [8, 128], strides = [1, 1]} : vector<8x512xf32> to vector<8x128xf32>
    %119 = arith.negf %118 : vector<8x128xf32>
    %120 = math.exp %119 : vector<8x128xf32>
    %cst_39 = arith.constant 1.000000e+00 : f32
    %121 = vector.broadcast %cst_39 : f32 to vector<8x128xf32>
    %122 = arith.addf %121, %120 : vector<8x128xf32>
    %123 = arith.divf %121, %122 : vector<8x128xf32>
    %124 = vector.extract_strided_slice %115 {offsets = [0, 128], sizes = [8, 128], strides = [1, 1]} : vector<8x256xf32> to vector<8x128xf32>
    %125 = arith.mulf %124, %98 : vector<8x128xf32>
    %126 = vector.extract_strided_slice %115 {offsets = [0, 0], sizes = [8, 128], strides = [1, 1]} : vector<8x256xf32> to vector<8x128xf32>
    %127 = arith.mulf %126, %117 : vector<8x128xf32>
    %128 = arith.addf %125, %127 : vector<8x128xf32>
    %129 = math.tanh %128 : vector<8x128xf32>
    %130 = arith.mulf %123, %129 : vector<8x128xf32>
    %131 = arith.index_cast %c3_i32 : i32 to index
    %c0_40 = arith.constant 0 : index
    %c0_41 = arith.constant 0 : index
    %132 = vector.load %arg10[%131, %c0_40, %c0_41] : memref<8x8x128xf32, #tpu.memory_space<vmem>>, vector<1x8x128xf32>
    %133 = vector.shape_cast %132 : vector<1x8x128xf32> to vector<8x128xf32>
    %134 = vector.shape_cast %130 : vector<8x128xf32> to vector<1x8x128xf32>
    tpu.vector_store %arg10[%131, %c0_40, %c0_41], %134 {strides = array<i32>} : memref<8x8x128xf32, #tpu.memory_space<vmem>>, vector<1x8x128xf32>,
    %c4_i32 = arith.constant 4 : i32
    %135 = arith.index_cast %c4_i32 : i32 to index
    %c0_42 = arith.constant 0 : index
    %c0_43 = arith.constant 0 : index
    %136 = vector.load %arg9[%135, %c0_42, %c0_43] : memref<8x8x512xf32, #tpu.memory_space<vmem>>, vector<1x8x512xf32>
    %137 = vector.shape_cast %136 : vector<1x8x512xf32> to vector<8x512xf32>
    %cst_44 = arith.constant dense<0.000000e+00> : vector<8x512xf32>
    %138 = tpu.matmul %130, %8, %cst_44 {dimension_numbers = #tpu.dot_dimension_numbers<[1], [0], [0], [1], [0, 0, 1, 1], [], []>} : vector<8x128xf32>, vector<128x512xf32>, vector<8x512xf32> -> vector<8x512xf32>
    %139 = arith.addf %137, %138 : vector<8x512xf32>
    %140 = vector.extract_strided_slice %139 {offsets = [0, 0], sizes = [8, 256], strides = [1, 1]} : vector<8x512xf32> to vector<8x256xf32>
    %141 = arith.negf %140 : vector<8x256xf32>
    %142 = math.exp %141 : vector<8x256xf32>
    %cst_45 = arith.constant 1.000000e+00 : f32
    %143 = vector.broadcast %cst_45 : f32 to vector<8x256xf32>
    %144 = arith.addf %143, %142 : vector<8x256xf32>
    %145 = arith.divf %143, %144 : vector<8x256xf32>
    %146 = vector.extract_strided_slice %139 {offsets = [0, 256], sizes = [8, 128], strides = [1, 1]} : vector<8x512xf32> to vector<8x128xf32>
    %147 = math.tanh %146 : vector<8x128xf32>
    %148 = vector.extract_strided_slice %139 {offsets = [0, 384], sizes = [8, 128], strides = [1, 1]} : vector<8x512xf32> to vector<8x128xf32>
    %149 = arith.negf %148 : vector<8x128xf32>
    %150 = math.exp %149 : vector<8x128xf32>
    %cst_46 = arith.constant 1.000000e+00 : f32
    %151 = vector.broadcast %cst_46 : f32 to vector<8x128xf32>
    %152 = arith.addf %151, %150 : vector<8x128xf32>
    %153 = arith.divf %151, %152 : vector<8x128xf32>
    %154 = vector.extract_strided_slice %145 {offsets = [0, 128], sizes = [8, 128], strides = [1, 1]} : vector<8x256xf32> to vector<8x128xf32>
    %155 = arith.mulf %154, %128 : vector<8x128xf32>
    %156 = vector.extract_strided_slice %145 {offsets = [0, 0], sizes = [8, 128], strides = [1, 1]} : vector<8x256xf32> to vector<8x128xf32>
    %157 = arith.mulf %156, %147 : vector<8x128xf32>
    %158 = arith.addf %155, %157 : vector<8x128xf32>
    %159 = math.tanh %158 : vector<8x128xf32>
    %160 = arith.mulf %153, %159 : vector<8x128xf32>
    %161 = arith.index_cast %c4_i32 : i32 to index
    %c0_47 = arith.constant 0 : index
    %c0_48 = arith.constant 0 : index
    %162 = vector.load %arg10[%161, %c0_47, %c0_48] : memref<8x8x128xf32, #tpu.memory_space<vmem>>, vector<1x8x128xf32>
    %163 = vector.shape_cast %162 : vector<1x8x128xf32> to vector<8x128xf32>
    %164 = vector.shape_cast %160 : vector<8x128xf32> to vector<1x8x128xf32>
    tpu.vector_store %arg10[%161, %c0_47, %c0_48], %164 {strides = array<i32>} : memref<8x8x128xf32, #tpu.memory_space<vmem>>, vector<1x8x128xf32>,
    %c5_i32 = arith.constant 5 : i32
    %165 = arith.index_cast %c5_i32 : i32 to index
    %c0_49 = arith.constant 0 : index
    %c0_50 = arith.constant 0 : index
    %166 = vector.load %arg9[%165, %c0_49, %c0_50] : memref<8x8x512xf32, #tpu.memory_space<vmem>>, vector<1x8x512xf32>
    %167 = vector.shape_cast %166 : vector<1x8x512xf32> to vector<8x512xf32>
    %cst_51 = arith.constant dense<0.000000e+00> : vector<8x512xf32>
    %168 = tpu.matmul %160, %8, %cst_51 {dimension_numbers = #tpu.dot_dimension_numbers<[1], [0], [0], [1], [0, 0, 1, 1], [], []>} : vector<8x128xf32>, vector<128x512xf32>, vector<8x512xf32> -> vector<8x512xf32>
    %169 = arith.addf %167, %168 : vector<8x512xf32>
    %170 = vector.extract_strided_slice %169 {offsets = [0, 0], sizes = [8, 256], strides = [1, 1]} : vector<8x512xf32> to vector<8x256xf32>
    %171 = arith.negf %170 : vector<8x256xf32>
    %172 = math.exp %171 : vector<8x256xf32>
    %cst_52 = arith.constant 1.000000e+00 : f32
    %173 = vector.broadcast %cst_52 : f32 to vector<8x256xf32>
    %174 = arith.addf %173, %172 : vector<8x256xf32>
    %175 = arith.divf %173, %174 : vector<8x256xf32>
    %176 = vector.extract_strided_slice %169 {offsets = [0, 256], sizes = [8, 128], strides = [1, 1]} : vector<8x512xf32> to vector<8x128xf32>
    %177 = math.tanh %176 : vector<8x128xf32>
    %178 = vector.extract_strided_slice %169 {offsets = [0, 384], sizes = [8, 128], strides = [1, 1]} : vector<8x512xf32> to vector<8x128xf32>
    %179 = arith.negf %178 : vector<8x128xf32>
    %180 = math.exp %179 : vector<8x128xf32>
    %cst_53 = arith.constant 1.000000e+00 : f32
    %181 = vector.broadcast %cst_53 : f32 to vector<8x128xf32>
    %182 = arith.addf %181, %180 : vector<8x128xf32>
    %183 = arith.divf %181, %182 : vector<8x128xf32>
    %184 = vector.extract_strided_slice %175 {offsets = [0, 128], sizes = [8, 128], strides = [1, 1]} : vector<8x256xf32> to vector<8x128xf32>
    %185 = arith.mulf %184, %158 : vector<8x128xf32>
    %186 = vector.extract_strided_slice %175 {offsets = [0, 0], sizes = [8, 128], strides = [1, 1]} : vector<8x256xf32> to vector<8x128xf32>
    %187 = arith.mulf %186, %177 : vector<8x128xf32>
    %188 = arith.addf %185, %187 : vector<8x128xf32>
    %189 = math.tanh %188 : vector<8x128xf32>
    %190 = arith.mulf %183, %189 : vector<8x128xf32>
    %191 = arith.index_cast %c5_i32 : i32 to index
    %c0_54 = arith.constant 0 : index
    %c0_55 = arith.constant 0 : index
    %192 = vector.load %arg10[%191, %c0_54, %c0_55] : memref<8x8x128xf32, #tpu.memory_space<vmem>>, vector<1x8x128xf32>
    %193 = vector.shape_cast %192 : vector<1x8x128xf32> to vector<8x128xf32>
    %194 = vector.shape_cast %190 : vector<8x128xf32> to vector<1x8x128xf32>
    tpu.vector_store %arg10[%191, %c0_54, %c0_55], %194 {strides = array<i32>} : memref<8x8x128xf32, #tpu.memory_space<vmem>>, vector<1x8x128xf32>,
    %c6_i32 = arith.constant 6 : i32
    %195 = arith.index_cast %c6_i32 : i32 to index
    %c0_56 = arith.constant 0 : index
    %c0_57 = arith.constant 0 : index
    %196 = vector.load %arg9[%195, %c0_56, %c0_57] : memref<8x8x512xf32, #tpu.memory_space<vmem>>, vector<1x8x512xf32>
    %197 = vector.shape_cast %196 : vector<1x8x512xf32> to vector<8x512xf32>
    %cst_58 = arith.constant dense<0.000000e+00> : vector<8x512xf32>
    %198 = tpu.matmul %190, %8, %cst_58 {dimension_numbers = #tpu.dot_dimension_numbers<[1], [0], [0], [1], [0, 0, 1, 1], [], []>} : vector<8x128xf32>, vector<128x512xf32>, vector<8x512xf32> -> vector<8x512xf32>
    %199 = arith.addf %197, %198 : vector<8x512xf32>
    %200 = vector.extract_strided_slice %199 {offsets = [0, 0], sizes = [8, 256], strides = [1, 1]} : vector<8x512xf32> to vector<8x256xf32>
    %201 = arith.negf %200 : vector<8x256xf32>
    %202 = math.exp %201 : vector<8x256xf32>
    %cst_59 = arith.constant 1.000000e+00 : f32
    %203 = vector.broadcast %cst_59 : f32 to vector<8x256xf32>
    %204 = arith.addf %203, %202 : vector<8x256xf32>
    %205 = arith.divf %203, %204 : vector<8x256xf32>
    %206 = vector.extract_strided_slice %199 {offsets = [0, 256], sizes = [8, 128], strides = [1, 1]} : vector<8x512xf32> to vector<8x128xf32>
    %207 = math.tanh %206 : vector<8x128xf32>
    %208 = vector.extract_strided_slice %199 {offsets = [0, 384], sizes = [8, 128], strides = [1, 1]} : vector<8x512xf32> to vector<8x128xf32>
    %209 = arith.negf %208 : vector<8x128xf32>
    %210 = math.exp %209 : vector<8x128xf32>
    %cst_60 = arith.constant 1.000000e+00 : f32
    %211 = vector.broadcast %cst_60 : f32 to vector<8x128xf32>
    %212 = arith.addf %211, %210 : vector<8x128xf32>
    %213 = arith.divf %211, %212 : vector<8x128xf32>
    %214 = vector.extract_strided_slice %205 {offsets = [0, 128], sizes = [8, 128], strides = [1, 1]} : vector<8x256xf32> to vector<8x128xf32>
    %215 = arith.mulf %214, %188 : vector<8x128xf32>
    %216 = vector.extract_strided_slice %205 {offsets = [0, 0], sizes = [8, 128], strides = [1, 1]} : vector<8x256xf32> to vector<8x128xf32>
    %217 = arith.mulf %216, %207 : vector<8x128xf32>
    %218 = arith.addf %215, %217 : vector<8x128xf32>
    %219 = math.tanh %218 : vector<8x128xf32>
    %220 = arith.mulf %213, %219 : vector<8x128xf32>
    %221 = arith.index_cast %c6_i32 : i32 to index
    %c0_61 = arith.constant 0 : index
    %c0_62 = arith.constant 0 : index
    %222 = vector.load %arg10[%221, %c0_61, %c0_62] : memref<8x8x128xf32, #tpu.memory_space<vmem>>, vector<1x8x128xf32>
    %223 = vector.shape_cast %222 : vector<1x8x128xf32> to vector<8x128xf32>
    %224 = vector.shape_cast %220 : vector<8x128xf32> to vector<1x8x128xf32>
    tpu.vector_store %arg10[%221, %c0_61, %c0_62], %224 {strides = array<i32>} : memref<8x8x128xf32, #tpu.memory_space<vmem>>, vector<1x8x128xf32>,
    %c7_i32 = arith.constant 7 : i32
    %225 = arith.index_cast %c7_i32 : i32 to index
    %c0_63 = arith.constant 0 : index
    %c0_64 = arith.constant 0 : index
    %226 = vector.load %arg9[%225, %c0_63, %c0_64] : memref<8x8x512xf32, #tpu.memory_space<vmem>>, vector<1x8x512xf32>
    %227 = vector.shape_cast %226 : vector<1x8x512xf32> to vector<8x512xf32>
    %cst_65 = arith.constant dense<0.000000e+00> : vector<8x512xf32>
    %228 = tpu.matmul %220, %8, %cst_65 {dimension_numbers = #tpu.dot_dimension_numbers<[1], [0], [0], [1], [0, 0, 1, 1], [], []>} : vector<8x128xf32>, vector<128x512xf32>, vector<8x512xf32> -> vector<8x512xf32>
    %229 = arith.addf %227, %228 : vector<8x512xf32>
    %230 = vector.extract_strided_slice %229 {offsets = [0, 0], sizes = [8, 256], strides = [1, 1]} : vector<8x512xf32> to vector<8x256xf32>
    %231 = arith.negf %230 : vector<8x256xf32>
    %232 = math.exp %231 : vector<8x256xf32>
    %cst_66 = arith.constant 1.000000e+00 : f32
    %233 = vector.broadcast %cst_66 : f32 to vector<8x256xf32>
    %234 = arith.addf %233, %232 : vector<8x256xf32>
    %235 = arith.divf %233, %234 : vector<8x256xf32>
    %236 = vector.extract_strided_slice %229 {offsets = [0, 256], sizes = [8, 128], strides = [1, 1]} : vector<8x512xf32> to vector<8x128xf32>
    %237 = math.tanh %236 : vector<8x128xf32>
    %238 = vector.extract_strided_slice %229 {offsets = [0, 384], sizes = [8, 128], strides = [1, 1]} : vector<8x512xf32> to vector<8x128xf32>
    %239 = arith.negf %238 : vector<8x128xf32>
    %240 = math.exp %239 : vector<8x128xf32>
    %cst_67 = arith.constant 1.000000e+00 : f32
    %241 = vector.broadcast %cst_67 : f32 to vector<8x128xf32>
    %242 = arith.addf %241, %240 : vector<8x128xf32>
    %243 = arith.divf %241, %242 : vector<8x128xf32>
    %244 = vector.extract_strided_slice %235 {offsets = [0, 128], sizes = [8, 128], strides = [1, 1]} : vector<8x256xf32> to vector<8x128xf32>
    %245 = arith.mulf %244, %218 : vector<8x128xf32>
    %246 = vector.extract_strided_slice %235 {offsets = [0, 0], sizes = [8, 128], strides = [1, 1]} : vector<8x256xf32> to vector<8x128xf32>
    %247 = arith.mulf %246, %237 : vector<8x128xf32>
    %248 = arith.addf %245, %247 : vector<8x128xf32>
    %249 = math.tanh %248 : vector<8x128xf32>
    %250 = arith.mulf %243, %249 : vector<8x128xf32>
    %251 = arith.index_cast %c7_i32 : i32 to index
    %c0_68 = arith.constant 0 : index
    %c0_69 = arith.constant 0 : index
    %252 = vector.load %arg10[%251, %c0_68, %c0_69] : memref<8x8x128xf32, #tpu.memory_space<vmem>>, vector<1x8x128xf32>
    %253 = vector.shape_cast %252 : vector<1x8x128xf32> to vector<8x128xf32>
    %254 = vector.shape_cast %250 : vector<8x128xf32> to vector<1x8x128xf32>
    tpu.vector_store %arg10[%251, %c0_68, %c0_69], %254 {strides = array<i32>} : memref<8x8x128xf32, #tpu.memory_space<vmem>>, vector<1x8x128xf32>,
    %c8_i32 = arith.constant 8 : i32
    %c0_70 = arith.constant 0 : index
    %c0_71 = arith.constant 0 : index
    %c0_72 = arith.constant 0 : index
    %255 = vector.load %arg10[%c0_70, %c0_71, %c0_72] : memref<8x8x128xf32, #tpu.memory_space<vmem>>, vector<8x8x128xf32>
    %256 = vector.shape_cast %255 : vector<8x8x128xf32> to vector<64x128xf32>
    %c0_73 = arith.constant 0 : index
    %c0_74 = arith.constant 0 : index
    %257 = vector.load %arg6[%c0_73, %c0_74] : memref<128x128xf32, #tpu.memory_space<vmem>>, vector<128x128xf32>
    %cst_75 = arith.constant dense<0.000000e+00> : vector<64x128xf32>
    %258 = tpu.matmul %256, %257, %cst_75 {dimension_numbers = #tpu.dot_dimension_numbers<[1], [0], [0], [1], [0, 0, 1, 1], [], []>} : vector<64x128xf32>, vector<128x128xf32>, vector<64x128xf32> -> vector<64x128xf32>
    %c0_76 = arith.constant 0 : index
    %c0_77 = arith.constant 0 : index
    %259 = vector.load %arg7[%c0_76, %c0_77] : memref<1x128xf32, #tpu.memory_space<vmem>>, vector<1x128xf32>
    %260 = vector.broadcast %259 : vector<1x128xf32> to vector<64x128xf32>
    %261 = arith.addf %258, %260 : vector<64x128xf32>
    %c0_78 = arith.constant 0 : index
    %c0_79 = arith.constant 0 : index
    %262 = vector.load %arg8[%c0_78, %c0_79] : memref<64x128xf32, #tpu.memory_space<vmem>>, vector<64x128xf32>
    tpu.vector_store %arg8[%c0_78, %c0_79], %261 {strides = array<i32>} : memref<64x128xf32, #tpu.memory_space<vmem>>, vector<64x128xf32>,
    return
  }
}

</mosaic_0001>

<bundles_post_ra>
// kernel: model6_forward.1
= control target key start
LH: loop header
LB: loop body
LE: loop exit
PB: predicated region body
PF: predicated region fallthrough
CT: control target
= control target key end

     0   :  { %vm63_vm0 = vcmask 261120   ;;  %s3549_s1 = inlined_call_operand.vmem [shape: f32[32,512], index: 1, kind: input, shape index: {}]   ;;  %s3550_s0 = inlined_call_operand.vmem [shape: f32[64,32], index: 0, kind: input, shape index: {}]   ;;  %s3551_s3 = inlined_call_operand.vmem [shape: f32[128,512], index: 3, kind: input, shape index: {}]   ;;  %s3552_s4 = inlined_call_operand.vmem [shape: f32[1,128], index: 4, kind: input, shape index: {}]   ;;  %s3553_s5 = inlined_call_operand.vmem [shape: f32[1,128], index: 5, kind: input, shape index: {}]   ;;  %s3554_s2 = inlined_call_operand.vmem [shape: f32[1,512], index: 2, kind: input, shape index: {}]   ;;  %s3555_s6 = inlined_call_operand.vmem [shape: f32[128,128], index: 6, kind: input, shape index: {}]   ;;  %s3556_s7 = inlined_call_operand.vmem [shape: f32[1,128], index: 7, kind: input, shape index: {}]   ;;  %s3557_s8 = inlined_call_operand.vmem [shape: f32[64,128], index: 8, kind: output, shape index: {}]  }
   0x1   :  { %v49_v0 = vld [vmem:[%s3549_s1 + $0x60] sm:$0xff]  ;;  %v51_v1 = vld [vmem:[%s3549_s1 + $0x70] sm:$0xff]  ;;  %v2003_v9 = vld [vmem:[%s3550_s0 + $0x28] sm:$0xff] }
   0x2   :  { %v45_v2 = vld [vmem:[%s3549_s1 + $0x40] sm:$0xff]  ;;  %1723 = vmatpush.msra.mxu1 %v49_v0  ;;  %1724 = vmatpush.msra.mxu3 %v49_v0  ;;  %v47_v3 = vld [vmem:[%s3549_s1 + $0x50] sm:$0xff]  ;;  %v52_v11 = vld [vmem:[%s3549_s1 + $0x78] sm:$0xff] }
   0x3   :  { %182 = vmatpush.msra.mxu2 %v51_v1  ;;  %v41_v4 = vld [vmem:[%s3549_s1 + $0x20] sm:$0xff]  ;;  %100 = vmatpush.msra.mxu0 %v49_v0  ;;  %v43_v5 = vld [vmem:[%s3549_s1 + $0x30] sm:$0xff]  ;;  %v50_v12 = vld [vmem:[%s3549_s1 + $0x68] sm:$0xff] }
   0x4   :  { %1725 = vmatpush.msra.mxu1 %v45_v2  ;;  %1726 = vmatpush.msra.mxu3 %v45_v2  ;;  %v37_v6 = vld [vmem:[%s3549_s1] sm:$0xff]  ;;  %v39_v7 = vld [vmem:[%s3549_s1 + $0x10] sm:$0xff]  ;;  %v46_v14 = vld [vmem:[%s3549_s1 + $0x48] sm:$0xff] }
   0x5   :  { %183 = vmatpush.msra.mxu2 %v47_v3  ;;  %101 = vmatpush.msra.mxu0 %v45_v2  ;;  %v1998_v8 = vld [vmem:[%s3550_s0 + $0x20] sm:$0xff]  ;;  %v48_v15 = vld [vmem:[%s3549_s1 + $0x58] sm:$0xff]  ;;  %v42_v17 = vld [vmem:[%s3549_s1 + $0x28] sm:$0xff] }
   0x6   :  { %1727 = vmatpush.msra.mxu1 %v41_v4  ;;  %1728 = vmatpush.msra.mxu3 %v41_v4  ;;  %v2008_v10 = vld [vmem:[%s3550_s0] sm:$0xff]  ;;  %v44_v18 = vld [vmem:[%s3549_s1 + $0x38] sm:$0xff]  ;;  %v38_v20 = vld [vmem:[%s3549_s1 + $0x8] sm:$0xff] }
   0x7   :  { %184 = vmatpush.msra.mxu2 %v43_v5  ;;  %102 = vmatpush.msra.mxu0 %v41_v4  ;;  %v2021_v13 = vld [vmem:[%s3551_s3 + $0x1e0] sm:$0xff]  ;;  %v40_v21 = vld [vmem:[%s3549_s1 + $0x18] sm:$0xff]  ;;  %v2062_v22 = vld [vmem:[%s3550_s0 + $0x30] sm:$0xff] }
   0x8   :  { %1729 = vmatpush.msra.mxu1 %v37_v6  ;;  %1730 = vmatpush.msra.mxu3 %v37_v6  ;;  %3652 = vst [vmem:[#allocation4_spill] sm:$0xff] %v2021_v13  ;;  %v2036_v16 = vld [vmem:[%s3551_s3 + $0x1c0] sm:$0xff]  ;;  %v2067_v23 = vld [vmem:[%s3550_s0 + $0x8] sm:$0xff]  ;;  %v2084_v26 = vld [vmem:[%s3551_s3 + $0x1f8] sm:$0xff] }
   0x9   :  { %185 = vmatpush.msra.mxu2 %v39_v7  ;;  %1671 = vmatmul.msk.f32.vlgmr.msra.gmra.mxu1 %vm63_vm0, %v1998_v8  ;;  %v2048_v19 = vld [vmem:[%s3551_s3 + $0x1a0] sm:$0xff]  ;;  %v2073_v24 = vld [vmem:[%s3551_s3 + $0x1e8] sm:$0xff]  ;;  %v2106_v29 = vld [vmem:[%s3551_s3 + $0x1d8] sm:$0xff] }
   0xa   :  { %1672 = vmatmul.msk.f32.vlgmr.msra.gmra.mxu3 %vm63_vm0, %v2003_v9  ;;  %1683 = vmatmul.msk.f32.vlgmr.msra.gmra.mxu2 %vm63_vm0, %v2008_v10  ;;  %v2079_v25 = vld [vmem:[%s3551_s3 + $0x180] sm:$0xff]  ;;  %v2093_v27 = vld [vmem:[%s3551_s3 + $0x1c8] sm:$0xff]  ;;  %v2124_v32 = vld [vmem:[%s3551_s3 + $0x1b8] sm:$0xff] }
   0xb   :  { %223 = vmatpush.msrb.mxu3 %v52_v11  ;;  %141 = vmatpush.msrb.mxu1 %v50_v12  ;;  %v2100_v28 = vld [vmem:[%s3551_s3 + $0x160] sm:$0xff]  ;;  %v2113_v30 = vld [vmem:[%s3551_s3 + $0x1a8] sm:$0xff]  ;;  %v2137_v34 = vld [vmem:[%s3550_s0 + $0x38] sm:$0xff] }
   0xc   :  { %360 = vmatpush.msrb.mxu2 %v2021_v13  ;;  %103 = vmatpush.msra.mxu0 %v37_v6  ;;  %v2118_v31 = vld [vmem:[%s3551_s3 + $0x140] sm:$0xff]  ;;  %v2132_v33 = vld [vmem:[%s3551_s3 + $0x188] sm:$0xff]  ;;  %v2144_v35 = vld [vmem:[%s3550_s0 + $0x10] sm:$0xff] }
   0xd   :  { %142 = vmatpush.msrb.mxu1 %v46_v14  ;;  %224 = vmatpush.msrb.mxu3 %v48_v15  ;;  %v2151_v36 = vld [vmem:[%s3551_s3 + $0x168] sm:$0xff]  ;;  %v2156_v37 = vld [vmem:[%s3551_s3 + $0x120] sm:$0xff]  ;;  %v2162_v38 = vld [vmem:[%s3551_s3 + $0x198] sm:$0xff] }
   0xe   :  { %361 = vmatpush.msrb.mxu2 %v2036_v16  ;;  %1667 = vmatmul.msk.f32.vlgmr.msra.gmra.mxu0 %vm63_vm0, %v2008_v10  ;;  %v2172_v39 = vld [vmem:[%s3551_s3 + $0x148] sm:$0xff]  ;;  %v2179_v40 = vld [vmem:[%s3551_s3 + $0x100] sm:$0xff]  ;;  %v2185_v41 = vld [vmem:[%s3551_s3 + $0x178] sm:$0xff] }
   0xf   :  { %143 = vmatpush.msrb.mxu1 %v42_v17  ;;  %225 = vmatpush.msrb.mxu3 %v44_v18  ;;  %v2192_v42 = vld [vmem:[%s3551_s3 + $0x128] sm:$0xff]  ;;  %v2197_v43 = vld [vmem:[%s3551_s3 + $0xe0] sm:$0xff]  ;;  %v2203_v44 = vld [vmem:[%s3551_s3 + $0x158] sm:$0xff] }
  0x10   :  { %362 = vmatpush.msrb.mxu2 %v2048_v19  ;;  %513 = vmatpush.msrb.mxu0 %v2021_v13  ;;  %v2212_v45 = vld [vmem:[%s3551_s3 + $0x108] sm:$0xff]  ;;  %v2219_v46 = vld [vmem:[%s3550_s0 + $0x18] sm:$0xff]  ;;  %v2231_v48 = vld [vmem:[%s3551_s3 + $0xc0] sm:$0xff] }
  0x11   :  { %144 = vmatpush.msrb.mxu1 %v38_v20  ;;  %226 = vmatpush.msrb.mxu3 %v40_v21  ;;  %v2226_v47 = vld [vmem:[%s3551_s3 + $0x138] sm:$0xff]  ;;  %v2237_v49 = vld [vmem:[%s3551_s3 + $0xe8] sm:$0xff]  ;;  %v2254_v51 = vld [vmem:[%s3551_s3 + $0xa0] sm:$0xff] }
  0x12   :  { %1673 = vmatmul.msk.f32.gmra.mxu3 %vm63_vm0, %v2062_v22  ;;  %1675 = vmatmul.msk.f32.vlgmr.msrb.gmra.mxu1 %vm63_vm0, %v2008_v10  ;;  %v2247_v50 = vld [vmem:[%s3551_s3 + $0x118] sm:$0xff]  ;;  %v2260_v52 = vld [vmem:[%s3551_s3 + $0xc8] sm:$0xff]  ;;  %v2272_v54 = vld [vmem:[%s3551_s3 + $0x80] sm:$0xff] }
  0x13   :  { %1684 = vmatmul.msk.f32.gmra.mxu2 %vm63_vm0, %v2067_v23  ;;  %380 = vmatpush.msra.mxu1 %v2073_v24  ;;  %v2267_v53 = vld [vmem:[%s3551_s3 + $0xf8] sm:$0xff]  ;;  %3653 = vst [vmem:[#allocation5_spill] sm:$0xff] %v2272_v54  ;;  %v2278_v55 = vld [vmem:[%s3551_s3 + $0xa8] sm:$0xff]  ;;  %v2295_v57 = vld [vmem:[%s3551_s3 + $0x60] sm:$0xff] }
  0x14   :  { %363 = vmatpush.msrb.mxu2 %v2079_v25  ;;  %420 = vmatpush.msra.mxu3 %v2084_v26  ;;  %3654 = vst [vmem:[#allocation6_spill] sm:$0xff] %v2278_v55  ;;  %v2287_v56 = vld [vmem:[%s3551_s3 + $0xd8] sm:$0xff]  ;;  %v2301_v58 = vld [vmem:[%s3551_s3 + $0x88] sm:$0xff]  ;;  %v2314_v59 = vld [vmem:[%s3551_s3 + $0x40] sm:$0xff] }
  0x15   :  { %381 = vmatpush.msra.mxu1 %v2093_v27  ;;  %514 = vmatpush.msrb.mxu0 %v2036_v16  ;;  %3655 = vst [vmem:[#allocation7_spill] sm:$0xff] %v2295_v57  ;;  %v2321_v60 = vld [vmem:[%s3551_s3 + $0xb8] sm:$0xff]  ;;  %v2326_v61 = vld [vmem:[%s3551_s3 + $0x68] sm:$0xff]  ;;  %v2332_v62 = vld [vmem:[%s3551_s3 + $0x20] sm:$0xff] }
  0x16   :  { %364 = vmatpush.msrb.mxu2 %v2100_v28  ;;  %421 = vmatpush.msra.mxu3 %v2106_v29  ;;  %3656 = vst [vmem:[#allocation8_spill] sm:$0xff] %v2301_v58  ;;  %v2339_v63 = vld [vmem:[%s3551_s3 + $0x48] sm:$0xff]  ;;  %v2347_v0 = vld [vmem:[%s3551_s3 + $0x98] sm:$0xff]  ;;  %v2359_v2 = vld [vmem:[%s3551_s3] sm:$0xff] }
  0x17   :  { %382 = vmatpush.msra.mxu1 %v2113_v30  ;;  %515 = vmatpush.msrb.mxu0 %v2048_v19  ;;  %3657 = vst [vmem:[#allocation9_spill] sm:$0xff] %v2314_v59  ;;  %v2352_v1 = vld [vmem:[%s3551_s3 + $0x28] sm:$0xff]  ;;  %v2375_v4 = vld [vmem:[%s3551_s3 + $0x1f0] sm:$0xff]  ;;  %v2389_v6 = vld [vmem:[%s3551_s3 + $0x78] sm:$0xff] }
  0x18   :  { %365 = vmatpush.msrb.mxu2 %v2118_v31  ;;  %422 = vmatpush.msra.mxu3 %v2124_v32  ;;  %3658 = vst [vmem:[#allocation10_spill] sm:$0xff] %v2321_v60  ;;  %v2365_v3 = vld [vmem:[%s3551_s3 + $0x8] sm:$0xff]  ;;  %v2384_v5 = vld [vmem:[%s3551_s3 + $0x1d0] sm:$0xff]  ;;  %v2394_v7 = vld [vmem:[%s3551_s3 + $0x58] sm:$0xff] }
  0x19   :  { %383 = vmatpush.msra.mxu1 %v2132_v33  ;;  %516 = vmatpush.msrb.mxu0 %v2079_v25  ;;  %3659 = vst [vmem:[#allocation11_spill] sm:$0xff] %v2326_v61  ;;  %v2411_v11 = vld [vmem:[%s3551_s3 + $0x190] sm:$0xff]  ;;  %v2430_v14 = vld [vmem:[%s3551_s3 + $0x38] sm:$0xff] }
  0x1a   :  { %1674 = vmatmul.msk.f32.gmra.mxu3 %vm63_vm0, %v2137_v34  ;;  %1676 = vmatmul.msk.f32.gmra.mxu1 %vm63_vm0, %v2067_v23  ;;  %3660 = vst [vmem:[#allocation12_spill] sm:$0xff] %v2332_v62  ;;  %v2425_v12 = vld [vmem:[%s3551_s3 + $0x170] sm:$0xff]  ;;  %v2435_v15 = vld [vmem:[%s3551_s3 + $0x18] sm:$0xff] }
  0x1b   :  { %1685 = vmatmul.msk.f32.gmra.mxu2 %vm63_vm0, %v2144_v35  ;;  %384 = vmatpush.msra.mxu1 %v2151_v36  ;;  %3661 = vst [vmem:[#allocation13_spill] sm:$0xff] %v2339_v63  ;;  %v2444_v17 = vld [vmem:[%s3551_s3 + $0x150] sm:$0xff] }
  0x1c   :  { %366 = vmatpush.msrb.mxu2 %v2156_v37  ;;  %423 = vmatpush.msra.mxu3 %v2162_v38  ;;  %3662 = vst [vmem:[#allocation14_spill] sm:$0xff] %v2347_v0  ;;  %v2452_v18 = vld [vmem:[%s3551_s3 + $0x130] sm:$0xff] }
  0x1d   :  { %385 = vmatpush.msra.mxu1 %v2172_v39  ;;  %1668 = vmatmul.msk.f32.gmra.mxu0 %vm63_vm0, %v2067_v23  ;;  %3663 = vst [vmem:[#allocation15_spill] sm:$0xff] %v2352_v1  ;;  %v2461_v20 = vld [vmem:[%s3551_s3 + $0x110] sm:$0xff] }
  0x1e   :  { %367 = vmatpush.msrb.mxu2 %v2179_v40  ;;  %424 = vmatpush.msra.mxu3 %v2185_v41  ;;  %3664 = vst [vmem:[#allocation16_spill] sm:$0xff] %v2359_v2  ;;  %v2474_v21 = vld [vmem:[%s3551_s3 + $0xf0] sm:$0xff] }
  0x1f   :  { %386 = vmatpush.msra.mxu1 %v2192_v42  ;;  %517 = vmatpush.msrb.mxu0 %v2100_v28  ;;  %3665 = vst [vmem:[#allocation17_spill] sm:$0xff] %v2365_v3 }
  0x20   :  { %368 = vmatpush.msrb.mxu2 %v2197_v43  ;;  %425 = vmatpush.msra.mxu3 %v2203_v44  ;;  %3666 = vst [vmem:[#allocation18_spill] sm:$0xff] %v2389_v6 }
  0x21   :  { %387 = vmatpush.msra.mxu1 %v2212_v45  ;;  %518 = vmatpush.msrb.mxu0 %v2118_v31  ;;  %3667 = vst [vmem:[#allocation19_spill] sm:$0xff] %v2394_v7 }
  0x22   :  { %1677 = vmatmul.msk.f32.gmra.mxu1 %vm63_vm0, %v2144_v35  ;;  %1691 = vmatmul.msk.f32.vlgmr.msrb.gmra.mxu3 %vm63_vm0, %v2008_v10  ;;  %v2402_v10 = vld [vmem:[%s3551_s3 + $0x1b0] sm:$0xff]  ;;  %3668 = vst [vmem:[#allocation20_spill] sm:$0xff] %v2430_v14 }
  0x23   :  { %1686 = vmatmul.msk.f32.gmra.mxu2 %vm63_vm0, %v2219_v46  ;;  %426 = vmatpush.msra.mxu3 %v2226_v47  ;;  %3669 = vst [vmem:[#allocation21_spill] sm:$0xff] %v2435_v15 }
  0x24   :  { %369 = vmatpush.msrb.mxu2 %v2231_v48  ;;  %388 = vmatpush.msra.mxu1 %v2237_v49 }
  0x25   :  { %427 = vmatpush.msra.mxu3 %v2247_v50  ;;  %519 = vmatpush.msrb.mxu0 %v2156_v37 }
  0x26   :  { %370 = vmatpush.msrb.mxu2 %v2254_v51  ;;  %389 = vmatpush.msra.mxu1 %v2260_v52 }
  0x27   :  { %428 = vmatpush.msra.mxu3 %v2267_v53  ;;  %520 = vmatpush.msrb.mxu0 %v2179_v40 }
  0x28   :  { %371 = vmatpush.msrb.mxu2 %v2272_v54  ;;  %390 = vmatpush.msra.mxu1 %v2278_v55 }
  0x29   :  { %429 = vmatpush.msra.mxu3 %v2287_v56  ;;  %1669 = vmatmul.msk.f32.gmra.mxu0 %vm63_vm0, %v2144_v35 }
  0x2a   :  { %1678 = vmatmul.msk.f32.gmra.mxu1 %vm63_vm0, %v2219_v46  ;;  %1692 = vmatmul.msk.f32.gmra.mxu3 %vm63_vm0, %v2067_v23  ;;  %v2483_v23 = vld [vmem:[%s3551_s3 + $0xd0] sm:$0xff] }
  0x2b   :  { %1687 = vmatmul.msk.f32.gmra.mxu2 %vm63_vm0, %v1998_v8  ;;  %391 = vmatpush.msra.mxu1 %v2301_v58 }
  0x2c   :  { %372 = vmatpush.msrb.mxu2 %v2295_v57  ;;  %521 = vmatpush.msrb.mxu0 %v2197_v43 }
  0x2d   :  { %430 = vmatpush.msra.mxu3 %v2321_v60  ;;  %392 = vmatpush.msra.mxu1 %v2326_v61 }
  0x2e   :  { %373 = vmatpush.msrb.mxu2 %v2314_v59  ;;  %522 = vmatpush.msrb.mxu0 %v2231_v48 }
  0x2f   :  { %393 = vmatpush.msra.mxu1 %v2339_v63  ;;  %431 = vmatpush.msra.mxu3 %v2347_v0 }
  0x30   :  { %374 = vmatpush.msrb.mxu2 %v2332_v62  ;;  %523 = vmatpush.msrb.mxu0 %v2254_v51 }
  0x31   :  { %394 = vmatpush.msra.mxu1 %v2352_v1  ;;  %432 = vmatpush.msra.mxu3 %v2389_v6 }
  0x32   :  { %1679 = vmatmul.msk.f32.gmra.mxu1 %vm63_vm0, %v1998_v8  ;;  %1693 = vmatmul.msk.f32.gmra.mxu3 %vm63_vm0, %v2144_v35  ;;  %v2500_v35 = vld [vmem:[%s3551_s3 + $0x90] sm:$0xff] }
  0x33   :  { %1688 = vmatmul.msk.f32.gmra.mxu2 %vm63_vm0, %v2003_v9  ;;  %395 = vmatpush.msra.mxu1 %v2365_v3  ;;  %3671 = vst [vmem:[#allocation23_spill] sm:$0xff] %v2500_v35 }
  0x34   :  { %375 = vmatpush.msrb.mxu2 %v2359_v2  ;;  %524 = vmatpush.msrb.mxu0 %v2272_v54 }
  0x35   :  { %533 = vmatpush.msrb.mxu1 %v2073_v24  ;;  %433 = vmatpush.msra.mxu3 %v2394_v7 }
  0x36   :  { %400 = vmatpush.msra.mxu2 %v2375_v4  ;;  %1670 = vmatmul.msk.f32.gmra.mxu0 %vm63_vm0, %v2219_v46 }
  0x37   :  { %534 = vmatpush.msrb.mxu1 %v2093_v27  ;;  %525 = vmatpush.msrb.mxu0 %v2295_v57 }
  0x38   :  { %401 = vmatpush.msra.mxu2 %v2384_v5  ;;  %434 = vmatpush.msra.mxu3 %v2430_v14 }
  0x39   :  { %535 = vmatpush.msrb.mxu1 %v2113_v30  ;;  %526 = vmatpush.msrb.mxu0 %v2314_v59 }
  0x3a   :  { %402 = vmatpush.msra.mxu2 %v2402_v10  ;;  %1680 = vmatmul.msk.f32.gmra.mxu1 %vm63_vm0, %v2003_v9 }
  0x3b   :  { %1694 = vmatmul.msk.f32.gmra.mxu3 %vm63_vm0, %v2219_v46  ;;  %1689 = vmatmul.msk.f32.gmra.mxu2 %vm63_vm0, %v2062_v22  ;;  %v1731_v46 = vld [vmem:[%s3552_s4] ss:$0 sm:$0xff] }
  0x3c   :  { %403 = vmatpush.msra.mxu2 %v2411_v11  ;;  %536 = vmatpush.msrb.mxu1 %v2132_v33 }
  0x3d   :  { %435 = vmatpush.msra.mxu3 %v2435_v15  ;;  %527 = vmatpush.msrb.mxu0 %v2332_v62  ;;  %v2540_v62 = vld [vmem:[%s3551_s3 + $0x10] sm:$0xff] }
  0x3e   :  { %404 = vmatpush.msra.mxu2 %v2425_v12  ;;  %537 = vmatpush.msrb.mxu1 %v2151_v36  ;;  %3675 = vst [vmem:[#allocation27_spill] sm:$0xff] %v2540_v62 }
  0x3f   :  { %573 = vmatpush.msrb.mxu3 %v2084_v26  ;;  %528 = vmatpush.msrb.mxu0 %v2359_v2  ;;  %v2516_v2 = vld [vmem:[%s3551_s3 + $0x70] sm:$0xff] }
  0x40   :  { %405 = vmatpush.msra.mxu2 %v2444_v17  ;;  %538 = vmatpush.msrb.mxu1 %v2172_v39  ;;  %3672 = vst [vmem:[#allocation24_spill] sm:$0xff] %v2516_v2 }
  0x41   :  { %574 = vmatpush.msrb.mxu3 %v2106_v29  ;;  %667 = vmatpush.msra.mxu0 %v2021_v13  ;;  %v2523_v13 = vld [vmem:[%s3551_s3 + $0x50] sm:$0xff] }
  0x42   :  { %406 = vmatpush.msra.mxu2 %v2452_v18  ;;  %1681 = vmatmul.msk.f32.gmra.mxu1 %vm63_vm0, %v2062_v22  ;;  %3673 = vst [vmem:[#allocation25_spill] sm:$0xff] %v2523_v13 }
  0x43   :  { %1695 = vmatmul.msk.f32.gmra.mxu3 %vm63_vm0, %v1998_v8  ;;  %1690 = vmatmul.msk.f32.gmra.mxu2 %vm63_vm0, %v2137_v34  ;;  %v2491_v8 = vld [vmem:[%s3551_s3 + $0xb0] sm:$0xff] }
  0x44   :  { %407 = vmatpush.msra.mxu2 %v2461_v20  ;;  %575 = vmatpush.msrb.mxu3 %v2124_v32  ;;  %3670 = vst [vmem:[#allocation22_spill] sm:$0xff] %v2491_v8 }
  0x45   :  { %539 = vmatpush.msrb.mxu1 %v2192_v42  ;;  %668 = vmatpush.msra.mxu0 %v2036_v16 }
  0x46   :  { %408 = vmatpush.msra.mxu2 %v2474_v21  ;;  %576 = vmatpush.msrb.mxu3 %v2162_v38 }
  0x47   :  { %540 = vmatpush.msrb.mxu1 %v2212_v45  ;;  %669 = vmatpush.msra.mxu0 %v2048_v19 }
  0x48   :  { %409 = vmatpush.msra.mxu2 %v2483_v23  ;;  %577 = vmatpush.msrb.mxu3 %v2185_v41 }
  0x49   :  { %541 = vmatpush.msrb.mxu1 %v2237_v49  ;;  %670 = vmatpush.msra.mxu0 %v2079_v25 }
  0x4a   :  { %410 = vmatpush.msra.mxu2 %v2491_v8  ;;  %578 = vmatpush.msrb.mxu3 %v2203_v44 }
  0x4b   :  { %1682 = vmatmul.msk.f32.gmra.mxu1 %vm63_vm0, %v2137_v34  ;;  %1696 = vmatmul.msk.f32.gmra.mxu3 %vm63_vm0, %v2003_v9  ;;  %v2531_v9 = vld [vmem:[%s3551_s3 + $0x30] sm:$0xff] }
  0x4c   :  { %411 = vmatpush.msra.mxu2 %v2500_v35  ;;  %579 = vmatpush.msrb.mxu3 %v2226_v47  ;;  %3674 = vst [vmem:[#allocation26_spill] sm:$0xff] %v2531_v9 }
  0x4d   :  { %376 = vmatmul.f32.vlgmr.msrb.gmra.mxu2 %v1731_v46  ;;  %542 = vmatpush.msrb.mxu1 %v2260_v52 }
  0x4e   :  { %412 = vmatpush.msra.mxu2 %v2516_v2  ;;  %580 = vmatpush.msrb.mxu3 %v2247_v50 }
  0x4f   :  { %543 = vmatpush.msrb.mxu1 %v2278_v55  ;;  %671 = vmatpush.msra.mxu0 %v2100_v28 }
  0x50   :  { %413 = vmatpush.msra.mxu2 %v2523_v13  ;;  %581 = vmatpush.msrb.mxu3 %v2267_v53 }
  0x51   :  { %544 = vmatpush.msrb.mxu1 %v2301_v58  ;;  %672 = vmatpush.msra.mxu0 %v2118_v31 }
  0x52   :  { %414 = vmatpush.msra.mxu2 %v2531_v9  ;;  %582 = vmatpush.msrb.mxu3 %v2287_v56 }
  0x53   :  { %1697 = vmatmul.msk.f32.gmra.mxu3 %vm63_vm0, %v2062_v22  ;;  %396 = vmatmul.f32.vlgmr.msra.gmra.mxu1 %v1731_v46  ;;  %v3676_v22 = vld [vmem:[#allocation12_spill] sm:$0xff] }
  0x54   :  { %415 = vmatpush.msra.mxu2 %v2540_v62  ;;  %583 = vmatpush.msrb.mxu3 %v2321_v60 }
  0x55   :  { %416 = vmatmul.f32.vlgmr.msra.gmra.mxu2 %v1731_v46  ;;  %545 = vmatpush.msrb.mxu1 %v2326_v61 }
  0x56   :  { %553 = vmatpush.msrb.mxu2 %v2375_v4  ;;  %584 = vmatpush.msrb.mxu3 %v2347_v0 }
  0x57   :  { %546 = vmatpush.msrb.mxu1 %v2339_v63  ;;  %673 = vmatpush.msra.mxu0 %v2156_v37 }
  0x58   :  { %554 = vmatpush.msrb.mxu2 %v2384_v5  ;;  %585 = vmatpush.msrb.mxu3 %v2389_v6 }
  0x59   :  { %547 = vmatpush.msrb.mxu1 %v2352_v1  ;;  %674 = vmatpush.msra.mxu0 %v2179_v40 }
  0x5a   :  { %555 = vmatpush.msrb.mxu2 %v2402_v10  ;;  %586 = vmatpush.msrb.mxu3 %v2394_v7 }
  0x5b   :  { %1698 = vmatmul.msk.f32.gmra.mxu3 %vm63_vm0, %v2137_v34  ;;  %548 = vmatpush.msrb.mxu1 %v2365_v3  ;;  %v3677_v34 = vld [vmem:[#allocation16_spill] sm:$0xff] }
  0x5c   :  { %556 = vmatpush.msrb.mxu2 %v2411_v11  ;;  %587 = vmatpush.msrb.mxu3 %v2430_v14 }
  0x5d   :  { %687 = vmatpush.msra.mxu1 %v2073_v24  ;;  %675 = vmatpush.msra.mxu0 %v2197_v43 }
  0x5e   :  { %557 = vmatpush.msrb.mxu2 %v2425_v12  ;;  %588 = vmatpush.msrb.mxu3 %v2435_v15 }
  0x5f   :  { %688 = vmatpush.msra.mxu1 %v2093_v27  ;;  %676 = vmatpush.msra.mxu0 %v2231_v48 }
  0x60   :  { %558 = vmatpush.msrb.mxu2 %v2444_v17 }
  0x61   :  { %689 = vmatpush.msra.mxu1 %v2113_v30  ;;  %677 = vmatpush.msra.mxu0 %v2254_v51 }
  0x62   :  { %559 = vmatpush.msrb.mxu2 %v2452_v18 }
  0x63   :  { %436 = vmatmul.f32.vlgmr.msra.gmra.mxu3 %v1731_v46  ;;  %690 = vmatpush.msra.mxu1 %v2132_v33 }
  0x64   :  { %560 = vmatpush.msrb.mxu2 %v2461_v20  ;;  %727 = vmatpush.msra.mxu3 %v2084_v26 }
  0x65   :  { %691 = vmatpush.msra.mxu1 %v2151_v36  ;;  %678 = vmatpush.msra.mxu0 %v2272_v54 }
  0x66   :  { %561 = vmatpush.msrb.mxu2 %v2474_v21  ;;  %728 = vmatpush.msra.mxu3 %v2106_v29 }
  0x67   :  { %692 = vmatpush.msra.mxu1 %v2172_v39  ;;  %679 = vmatpush.msra.mxu0 %v2295_v57 }
  0x68   :  { %562 = vmatpush.msrb.mxu2 %v2483_v23  ;;  %729 = vmatpush.msra.mxu3 %v2124_v32 }
  0x69   :  { %693 = vmatpush.msra.mxu1 %v2192_v42  ;;  %680 = vmatpush.msra.mxu0 %v2314_v59 }
  0x6a   :  { %563 = vmatpush.msrb.mxu2 %v2491_v8  ;;  %730 = vmatpush.msra.mxu3 %v2162_v38 }
  0x6b   :  { %694 = vmatpush.msra.mxu1 %v2212_v45  ;;  %681 = vmatpush.msra.mxu0 %v3676_v22 }
  0x6c   :  { %564 = vmatpush.msrb.mxu2 %v2500_v35  ;;  %731 = vmatpush.msra.mxu3 %v2185_v41 }
  0x6d   :  { %695 = vmatpush.msra.mxu1 %v2237_v49  ;;  %682 = vmatpush.msra.mxu0 %v3677_v34 }
  0x6e   :  { %565 = vmatpush.msrb.mxu2 %v2516_v2  ;;  %732 = vmatpush.msra.mxu3 %v2203_v44 }
  0x6f   :  { %696 = vmatpush.msra.mxu1 %v2260_v52 }
  0x70   :  { %566 = vmatpush.msrb.mxu2 %v2523_v13  ;;  %733 = vmatpush.msra.mxu3 %v2226_v47 }
  0x71   :  { %697 = vmatpush.msra.mxu1 %v2278_v55 }
  0x72   :  { %567 = vmatpush.msrb.mxu2 %v2531_v9  ;;  %734 = vmatpush.msra.mxu3 %v2247_v50 }
  0x73   :  { %698 = vmatpush.msra.mxu1 %v2301_v58 }
  0x74   :  { %568 = vmatpush.msrb.mxu2 %v2540_v62  ;;  %735 = vmatpush.msra.mxu3 %v2267_v53 }
  0x75   :  { %699 = vmatpush.msra.mxu1 %v2326_v61 }
  0x76   :  { %707 = vmatpush.msra.mxu2 %v2375_v4  ;;  %736 = vmatpush.msra.mxu3 %v2287_v56 }
  0x77   :  { %700 = vmatpush.msra.mxu1 %v2339_v63 }
  0x78   :  { %708 = vmatpush.msra.mxu2 %v2384_v5  ;;  %737 = vmatpush.msra.mxu3 %v2321_v60 }
  0x79   :  { %701 = vmatpush.msra.mxu1 %v2352_v1 }
  0x7a   :  { %709 = vmatpush.msra.mxu2 %v2402_v10  ;;  %738 = vmatpush.msra.mxu3 %v2347_v0 }
  0x7b   :  { %702 = vmatpush.msra.mxu1 %v2365_v3 }
  0x7c   :  { %710 = vmatpush.msra.mxu2 %v2411_v11  ;;  %739 = vmatpush.msra.mxu3 %v2389_v6 }
  0x7e   :  { %711 = vmatpush.msra.mxu2 %v2425_v12  ;;  %740 = vmatpush.msra.mxu3 %v2394_v7 }
  0x80   :  { %712 = vmatpush.msra.mxu2 %v2444_v17  ;;  %741 = vmatpush.msra.mxu3 %v2430_v14 }
  0x82   :  { %713 = vmatpush.msra.mxu2 %v2452_v18  ;;  %742 = vmatpush.msra.mxu3 %v2435_v15 }
  0x84   :  { %714 = vmatpush.msra.mxu2 %v2461_v20 }
  0x86   :  { %715 = vmatpush.msra.mxu2 %v2474_v21  ;;  %v2631_v46 = vpop.f32.mrf.mxu1 }
  0x87   :  { %3678 = vst [vmem:[#allocation28_spill] sm:$0xff] %v2631_v46  ;;  %v53_v46 = vld [vmem:[%s3554_s2] sm:$0xf] }
  0x88   :  { %716 = vmatpush.msra.mxu2 %v2483_v23  ;;  %v2647_v14 = vperm.slane %v53_v46, 2  ;;  %v56_v22 = vperm.slane %v53_v46, 1 }
  0x8a   :  { %717 = vmatpush.msra.mxu2 %v2491_v8 }
  0x8c   :  { %718 = vmatpush.msra.mxu2 %v2500_v35 }
  0x8d   :  { %v2637_v3 = vpop.f32.mrf.mxu3  ;;  %v2639_v34 = vpop.f32.mrf.mxu2 }
  0x8e   :  { %719 = vmatpush.msra.mxu2 %v2516_v2  ;;  %3679 = vst [vmem:[#allocation29_spill] sm:$0xff] %v2637_v3 }
  0x8f   :  { %v146_v15 = vpop.f32.mrf.mxu1 }
  0x90   :  { %720 = vmatpush.msra.mxu2 %v2523_v13 }
  0x92   :  { %721 = vmatpush.msra.mxu2 %v2531_v9 }
  0x94   :  { %722 = vmatpush.msra.mxu2 %v2540_v62 }
  0x95   :  { %v2649_v1 = vpop.f32.mrf.mxu3 }
  0x96   :  { %3680 = vst [vmem:[#allocation30_spill] sm:$0xff] %v2649_v1  ;;  %v190_v7 = vpop.f32.mrf.mxu2 }
  0x97   :  { %v2652_v3 = vadd.f32 %v190_v7, %v2647_v14  ;;  %v149_v63 = vpop.f32.mrf.mxu1 }
  0x98   :  { %v2654_v13 = vadd.f32 %v149_v63, %v56_v22 }
  0x99   :  { %3681 = vst [vmem:[#allocation31_spill] sm:$0xff] %v2652_v3  ;;  %v58_v3 = vperm.slane %v53_v46, 3 }
  0x9a   :  { %3682 = vst [vmem:[#allocation32_spill] sm:$0xff] %v2654_v13 }
  0x9d   :  { %v2656_v59 = vpop.f32.mrf.mxu3 }
  0x9e   :  { %3683 = vst [vmem:[#allocation33_spill] sm:$0xff] %v2656_v59  ;;  %v193_v9 = vpop.f32.mrf.mxu2 }
  0x9f   :  { %v2659_v62 = vadd.f32 %v193_v9, %v2647_v14  ;;  %v152_v6 = vpop.f32.mrf.mxu1 }
  0xa0   :  { %v2661_v2 = vadd.f32 %v152_v6, %v56_v22 }
  0xa1   :  { %3684 = vst [vmem:[#allocation34_spill] sm:$0xff] %v2659_v62 }
  0xa2   :  { %3685 = vst [vmem:[#allocation35_spill] sm:$0xff] %v2661_v2 }
  0xa5   :  { %v228_v61 = vpop.f32.mrf.mxu3 }
  0xa6   :  { %v196_v57 = vpop.f32.mrf.mxu2 }
  0xa7   :  { %v2664_v1 = vadd.f32 %v196_v57, %v2647_v14  ;;  %v155_v0 = vpop.f32.mrf.mxu1 }
  0xa8   :  { %v2666_v7 = vadd.f32 %v155_v0, %v56_v22 }
  0xa9   :  { %3686 = vst [vmem:[#allocation36_spill] sm:$0xff] %v2664_v1 }
  0xaa   :  { %3687 = vst [vmem:[#allocation37_spill] sm:$0xff] %v2666_v7 }
  0xad   :  { %v231_v63 = vpop.f32.mrf.mxu3 }
  0xae   :  { %v199_v13 = vpop.f32.mrf.mxu2  ;;  %v2668_v35 = vadd.f32 %v231_v63, %v58_v3 }
  0xaf   :  { %v2671_v59 = vadd.f32 %v199_v13, %v2647_v14  ;;  %v158_v9 = vpop.f32.mrf.mxu1 }
  0xb0   :  { %3688 = vst [vmem:[#allocation38_spill] sm:$0xff] %v2668_v35  ;;  %v2673_v62 = vadd.f32 %v158_v9, %v56_v22 }
  0xb1   :  { %3689 = vst [vmem:[#allocation39_spill] sm:$0xff] %v2671_v59 }
  0xb2   :  { %3690 = vst [vmem:[#allocation40_spill] sm:$0xff] %v2673_v62 }
  0xb5   :  { %v234_v6 = vpop.f32.mrf.mxu3 }
  0xb6   :  { %v202_v2 = vpop.f32.mrf.mxu2  ;;  %v2675_v58 = vadd.f32 %v234_v6, %v58_v3 }
  0xb7   :  { %v2678_v57 = vadd.f32 %v202_v2, %v2647_v14  ;;  %v161_v0 = vpop.f32.mrf.mxu1 }
  0xb8   :  { %3691 = vst [vmem:[#allocation41_spill] sm:$0xff] %v2675_v58  ;;  %v2680_v1 = vadd.f32 %v161_v0, %v56_v22 }
  0xb9   :  { %3692 = vst [vmem:[#allocation42_spill] sm:$0xff] %v2678_v57  ;;  %v105_v57 = vpop.f32.mrf.mxu0 }
  0xba   :  { %3693 = vst [vmem:[#allocation43_spill] sm:$0xff] %v2680_v1 }
  0xbe   :  { %v237_v7 = vpop.f32.mrf.mxu3  ;;  %v205_v63 = vpop.f32.mrf.mxu2 }
  0xbf   :  { %v2682_v54 = vadd.f32 %v237_v7, %v58_v3  ;;  %v164_v35 = vpop.f32.mrf.mxu1  ;;  %v2685_v13 = vadd.f32 %v205_v63, %v2647_v14  ;;  %v2696_v7 = vperm.slane %v53_v46, 0  ;;  %v147_v63 = vadd.f32 %v146_v15, %v56_v22 }
  0xc0   :  { %v2687_v9 = vadd.f32 %v164_v35, %v56_v22 }
  0xc1   :  { %3694 = vst [vmem:[#allocation44_spill] sm:$0xff] %v2682_v54  ;;  %v106_v1 = vadd.f32 %v105_v57, %v2696_v7 }
  0xc2   :  { %3695 = vst [vmem:[#allocation45_spill] sm:$0xff] %v2685_v13 }
  0xc3   :  { %3696 = vst [vmem:[#allocation46_spill] sm:$0xff] %v2687_v9 }
  0xc4   :  { %3700 = vst [vmem:[#allocation50_spill] sm:$0xff] %v2696_v7 }
  0xc6   :  { %v240_v59 = vpop.f32.mrf.mxu3  ;;  %v208_v6 = vpop.f32.mrf.mxu2 }
  0xc7   :  { %v2689_v62 = vadd.f32 %v240_v59, %v58_v3  ;;  %v2692_v2 = vadd.f32 %v208_v6, %v2647_v14 }
  0xc8   :  { %v167_v58 = vpop.f32.mrf.mxu1 }
  0xc9   :  { %3697 = vst [vmem:[#allocation47_spill] sm:$0xff] %v2689_v62  ;;  %v2694_v0 = vadd.f32 %v167_v58, %v56_v22 }
  0xca   :  { %3698 = vst [vmem:[#allocation48_spill] sm:$0xff] %v2692_v2 }
  0xcb   :  { %3699 = vst [vmem:[#allocation49_spill] sm:$0xff] %v2694_v0 }
  0xce   :  { %v243_v54 = vpop.f32.mrf.mxu3 }
  0xcf   :  { %v2699_v13 = vadd.f32 %v243_v54, %v58_v3 }
  0xd0   :  { %v377_v35 = vpop.f32.mrf.mxu2  ;;  %v397_v9 = vpop.f32.mrf.mxu1 }
  0xd1   :  { %3701 = vst [vmem:[#allocation51_spill] sm:$0xff] %v2699_v13  ;;  %v440_v59 = vadd.f32 %v377_v35, %v106_v1  ;;  %v441_v62 = vadd.f32 %v397_v9, %v147_v63  ;;  %v229_v1 = vadd.f32 %v228_v61, %v58_v3 }
  0xd3   :  { %v1699_v60 = vmul.f32 -1.442695, %v440_v59  ;;  %v1700_v8 = vmul.f32 -1.442695, %v441_v62 }
  0xd5   :  { %1734 = vpow2.f32 %v1699_v60 }
  0xd6   :  { %1736 = vpow2.f32 %v1700_v8  ;;  %v246_v6 = vpop.f32.mrf.mxu3 }
  0xd7   :  { %v2701_v58 = vadd.f32 %v246_v6, %v58_v3 }
  0xd9   :  { %3702 = vst [vmem:[#allocation52_spill] sm:$0xff] %v2701_v58  ;;  %v417_v58 = vpop.f32.mrf.mxu2 }
  0xdb   :  { %v1735_v2 = vpop.eup %1734 }
  0xdc   :  { %v1737_v46 = vpop.eup %1736  ;;  %v450_v0 = vadd.f32 1.0, %v1735_v2  ;;  %v188_v2 = vadd.f32 %v2639_v34, %v2647_v14 }
  0xdd   :  { %v451_v55 = vadd.f32 1.0, %v1737_v46 }
  0xde   :  { %1738 = vrcp.f32 %v450_v0  ;;  %v249_v57 = vpop.f32.mrf.mxu3  ;;  %vm457_vm1 = vweird.f32 %v450_v0  ;;  %v442_v61 = vadd.f32 %v417_v58, %v188_v2  ;;  %v1732_v58 = vld [vmem:[%s3553_s5] ss:$0 sm:$0xff] }
  0xdf   :  { %1740 = vrcp.f32 %v451_v55  ;;  %v2703_v54 = vadd.f32 %v249_v57, %v58_v3  ;;  %v478_v57 = vand.u32 2147483648, %v451_v55  ;;  %v463_v3 = vand.u32 2147483648, %v450_v0 }
  0xe0   :  { %vm472_vm4 = vweird.f32 %v451_v55 }
  0xe1   :  { %3703 = vst [vmem:[#allocation53_spill] sm:$0xff] %v2703_v54  ;;  %v464_v14 = vor.u32 1.1754944e-38, %v463_v3 }
  0xe4   :  { %v1739_v15 = vpop.eup %1738 }
  0xe5   :  { %v1741_v22 = vpop.eup %1740  ;;  %v453_v9 = vmul.f32 %v1739_v15, %v450_v0  ;;  %vm458_vm2 = vweird.f32 %v1739_v15 }
  0xe6   :  { %v468_v63 = vmul.f32 %v1741_v22, %v451_v55  ;;  %v437_v62 = vpop.f32.mrf.mxu3  ;;  %vm473_vm3 = vweird.f32 %v1741_v22  ;;  %vm2707_vm5 = vmor %vm457_vm1, %vm458_vm2 }
  0xe7   :  { %v454_v60 = vsub.f32 1.0, %v453_v9  ;;  %v443_v8 = vadd.f32 %v437_v62, %v229_v1  ;;  %v461_v9 = vand.u32 2147483647, %v450_v0  ;;  %vm474_vm6 = vmor %vm472_vm4, %vm473_vm3 }
  0xe8   :  { %v469_v35 = vsub.f32 1.0, %v468_v63  ;;  %v476_v63 = vand.u32 2147483647, %v451_v55 }
  0xe9   :  { %v1701_v59 = vmul.f32 -1.442695, %v443_v8  ;;  %v455_v13 = vmul.f32 %v1739_v15, %v454_v60  ;;  %v479_v8 = vor.u32 1.1754944e-38, %v478_v57  ;;  %vm462_vm7 = vcmp.eq.f32.partialorder %v461_v9, 8.507059e+37 }
  0xea   :  { %v470_v6 = vmul.f32 %v1741_v22, %v469_v35  ;;  %vm477_vm8 = vcmp.eq.f32.partialorder %v476_v63, 8.507059e+37 }
  0xeb   :  { %1742 = vpow2.f32 %v1701_v59  ;;  %v456_v54 = vadd.f32 %v1739_v15, %v455_v13 }
  0xec   :  { %v471_v46 = vadd.f32 %v1741_v22, %v470_v6  ;;  %1744 = vtanh.f32 %v442_v61 }
  0xed   :  { %v460_v13 = vsel %vm2707_vm5, %v1739_v15, %v456_v54 }
  0xee   :  { %v475_v60 = vsel %vm474_vm6, %v1741_v22, %v471_v46  ;;  %v465_v0 = vsel %vm462_vm7, %v464_v14, %v460_v13  ;;  %v3732_v14 = vld [vmem:[#allocation32_spill] sm:$0xff] }
  0xef   :  { %v480_v35 = vsel %vm477_vm8, %v479_v8, %v475_v60  ;;  %v3707_v8 = vld [vmem:[#allocation4_spill] sm:$0xff] }
  0xf0   :  { %v502_v55 = vmul.f32 %v1732_v58, %v480_v35 }
  0xf1   :  { %v1743_v62 = vpop.eup %1742 }
  0xf2   :  { %v486_v34 = vadd.f32 1.0, %v1743_v62  ;;  %v1745_v59 = vpop.eup %1744 }
  0xf3   :  { %v503_v6 = vmul.f32 %v1745_v59, %v465_v0  ;;  %v3733_v0 = vld [vmem:[#allocation38_spill] sm:$0xff] }
  0xf4   :  { %1746 = vrcp.f32 %v486_v34  ;;  %v498_v61 = vand.u32 2147483648, %v486_v34  ;;  %v496_v1 = vand.u32 2147483647, %v486_v34  ;;  %vm492_vm10 = vweird.f32 %v486_v34 }
  0xf5   :  { %v2716_v2 = vadd.f32 %v503_v6, %v502_v55 }
  0xf6   :  { %v499_v15 = vor.u32 1.1754944e-38, %v498_v61  ;;  %vm497_vm12 = vcmp.eq.f32.partialorder %v496_v1, 8.507059e+37 }
  0xf7   :  { %1748 = vtanh.f32 %v2716_v2 }
  0xfa   :  { %v1747_v22 = vpop.eup %1746 }
  0xfb   :  { %v488_v46 = vmul.f32 %v1747_v22, %v486_v34  ;;  %vm493_vm9 = vweird.f32 %v1747_v22 }
  0xfc   :  { %vm494_vm11 = vmor %vm492_vm10, %vm493_vm9 }
  0xfd   :  { %v489_v57 = vsub.f32 1.0, %v488_v46  ;;  %v1749_v63 = vpop.eup %1748 }
  0xff   :  { %v490_v3 = vmul.f32 %v1747_v22, %v489_v57 }
 0x101   :  { %v491_v54 = vadd.f32 %v1747_v22, %v490_v3 }
 0x103   :  { %v495_v9 = vsel %vm494_vm11, %v1747_v22, %v491_v54 }
 0x104   :  { %v500_v62 = vsel %vm497_vm12, %v499_v15, %v495_v9  ;;  %v3734_v15 = vld [vmem:[#allocation31_spill] sm:$0xff] }
 0x105   :  { %v2719_v60 = vmul.f32 %v1749_v63, %v500_v62 }
 0x107   :  { %3706 = vst [vmem:[#allocation54_spill] sm:$0xff] %v2719_v60  ;;  %529 = vmatmul.f32.vlgmr.msrb.gmra.mxu0 %v2719_v60  ;;  %549 = vmatmul.f32.vlgmr.msrb.gmra.mxu1 %v2719_v60 }
 0x108   :  { %569 = vmatmul.f32.vlgmr.msrb.gmra.mxu2 %v2719_v60  ;;  %589 = vmatmul.f32.vlgmr.msrb.gmra.mxu3 %v2719_v60 }
 0x109   :  { %821 = vmatpush.msrb.mxu0 %v3707_v8  ;;  %841 = vmatpush.msrb.mxu1 %v2073_v24  ;;  %v3710_v24 = vld [vmem:[#allocation10_spill] sm:$0xff] }
 0x10a   :  { %861 = vmatpush.msrb.mxu2 %v2375_v4  ;;  %881 = vmatpush.msrb.mxu3 %v2084_v26  ;;  %v3712_v26 = vld [vmem:[#allocation8_spill] sm:$0xff] }
 0x10b   :  { %822 = vmatpush.msrb.mxu0 %v2036_v16  ;;  %842 = vmatpush.msrb.mxu1 %v2093_v27  ;;  %v3708_v16 = vld [vmem:[#allocation6_spill] sm:$0xff]  ;;  %v3713_v27 = vld [vmem:[#allocation23_spill] sm:$0xff] }
 0x10c   :  { %862 = vmatpush.msrb.mxu2 %v2384_v5  ;;  %882 = vmatpush.msrb.mxu3 %v2106_v29  ;;  %v3715_v29 = vld [vmem:[#allocation7_spill] sm:$0xff] }
 0x10d   :  { %823 = vmatpush.msrb.mxu0 %v2048_v19  ;;  %843 = vmatpush.msrb.mxu1 %v2113_v30  ;;  %v3709_v19 = vld [vmem:[#allocation22_spill] sm:$0xff]  ;;  %v3716_v30 = vld [vmem:[#allocation11_spill] sm:$0xff] }
 0x10e   :  { %863 = vmatpush.msrb.mxu2 %v2402_v10  ;;  %883 = vmatpush.msrb.mxu3 %v2124_v32  ;;  %v3718_v32 = vld [vmem:[#allocation18_spill] sm:$0xff] }
 0x10f   :  { %824 = vmatpush.msrb.mxu0 %v2079_v25  ;;  %844 = vmatpush.msrb.mxu1 %v2132_v33  ;;  %v3711_v25 = vld [vmem:[#allocation5_spill] sm:$0xff] }
 0x110   :  { %864 = vmatpush.msrb.mxu2 %v2411_v11  ;;  %884 = vmatpush.msrb.mxu3 %v2162_v38  ;;  %v3719_v33 = vld [vmem:[#allocation9_spill] sm:$0xff]  ;;  %v3722_v38 = vld [vmem:[#allocation19_spill] sm:$0xff] }
 0x111   :  { %825 = vmatpush.msrb.mxu0 %v2100_v28  ;;  %845 = vmatpush.msrb.mxu1 %v2151_v36  ;;  %v3714_v28 = vld [vmem:[#allocation14_spill] sm:$0xff]  ;;  %v3720_v36 = vld [vmem:[#allocation13_spill] sm:$0xff] }
 0x112   :  { %865 = vmatpush.msrb.mxu2 %v2425_v12  ;;  %885 = vmatpush.msrb.mxu3 %v2185_v41  ;;  %v3725_v41 = vld [vmem:[#allocation26_spill] sm:$0xff] }
 0x113   :  { %826 = vmatpush.msrb.mxu0 %v2118_v31  ;;  %846 = vmatpush.msrb.mxu1 %v2172_v39  ;;  %v3717_v31 = vld [vmem:[#allocation24_spill] sm:$0xff] }
 0x114   :  { %866 = vmatpush.msrb.mxu2 %v2444_v17  ;;  %886 = vmatpush.msrb.mxu3 %v2203_v44  ;;  %v3723_v39 = vld [vmem:[#allocation12_spill] sm:$0xff]  ;;  %v3728_v44 = vld [vmem:[#allocation17_spill] sm:$0xff] }
 0x115   :  { %827 = vmatpush.msrb.mxu0 %v2156_v37  ;;  %847 = vmatpush.msrb.mxu1 %v2192_v42  ;;  %v3721_v37 = vld [vmem:[#allocation25_spill] sm:$0xff]  ;;  %v3726_v42 = vld [vmem:[#allocation20_spill] sm:$0xff] }
 0x116   :  { %867 = vmatpush.msrb.mxu2 %v2452_v18  ;;  %887 = vmatpush.msrb.mxu3 %v2226_v47  ;;  %v3730_v47 = vld [vmem:[#allocation21_spill] sm:$0xff] }
 0x117   :  { %828 = vmatpush.msrb.mxu0 %v2179_v40  ;;  %848 = vmatpush.msrb.mxu1 %v2212_v45  ;;  %v3724_v40 = vld [vmem:[#allocation15_spill] sm:$0xff] }
 0x118   :  { %868 = vmatpush.msrb.mxu2 %v2461_v20  ;;  %888 = vmatpush.msrb.mxu3 %v2247_v50  ;;  %v3729_v45 = vld [vmem:[#allocation27_spill] sm:$0xff] }
 0x119   :  { %829 = vmatpush.msrb.mxu0 %v2197_v43  ;;  %849 = vmatpush.msrb.mxu1 %v2237_v49  ;;  %v3727_v43 = vld [vmem:[#allocation16_spill] sm:$0xff] }
 0x11a   :  { %869 = vmatpush.msrb.mxu2 %v2474_v21  ;;  %889 = vmatpush.msrb.mxu3 %v2267_v53 }
 0x11b   :  { %830 = vmatpush.msrb.mxu0 %v2231_v48  ;;  %850 = vmatpush.msrb.mxu1 %v2260_v52  ;;  %v108_v48 = vpop.f32.mrf.mxu0 }
 0x11c   :  { %870 = vmatpush.msrb.mxu2 %v2483_v23  ;;  %890 = vmatpush.msrb.mxu3 %v2287_v56 }
 0x11d   :  { %831 = vmatpush.msrb.mxu0 %v2254_v51  ;;  %851 = vmatpush.msrb.mxu1 %v3708_v16  ;;  %v109_v51 = vadd.f32 %v108_v48, %v2696_v7 }
 0x11e   :  { %871 = vmatpush.msrb.mxu2 %v3709_v19  ;;  %891 = vmatpush.msrb.mxu3 %v3710_v24 }
 0x11f   :  { %832 = vmatpush.msrb.mxu0 %v3711_v25  ;;  %852 = vmatpush.msrb.mxu1 %v3712_v26 }
 0x120   :  { %872 = vmatpush.msrb.mxu2 %v3713_v27  ;;  %892 = vmatpush.msrb.mxu3 %v3714_v28 }
 0x121   :  { %833 = vmatpush.msrb.mxu0 %v3715_v29  ;;  %853 = vmatpush.msrb.mxu1 %v3716_v30 }
 0x122   :  { %873 = vmatpush.msrb.mxu2 %v3717_v31  ;;  %893 = vmatpush.msrb.mxu3 %v3718_v32 }
 0x123   :  { %834 = vmatpush.msrb.mxu0 %v3719_v33  ;;  %854 = vmatpush.msrb.mxu1 %v3720_v36  ;;  %v2789_v49 = vpop.f32.mrf.mxu0 }
 0x124   :  { %874 = vmatpush.msrb.mxu2 %v3721_v37  ;;  %894 = vmatpush.msrb.mxu3 %v3722_v38 }
 0x125   :  { %835 = vmatpush.msrb.mxu0 %v3723_v39  ;;  %855 = vmatpush.msrb.mxu1 %v3724_v40 }
 0x126   :  { %875 = vmatpush.msrb.mxu2 %v3725_v41  ;;  %895 = vmatpush.msrb.mxu3 %v3726_v42 }
 0x127   :  { %836 = vmatpush.msrb.mxu0 %v3727_v43  ;;  %856 = vmatpush.msrb.mxu1 %v3728_v44 }
 0x128   :  { %876 = vmatpush.msrb.mxu2 %v3729_v45  ;;  %896 = vmatpush.msrb.mxu3 %v3730_v47 }
 0x12b   :  { %v2791_v50 = vpop.f32.mrf.mxu0 }
 0x12c   :  { %3731 = vst [vmem:[#allocation4_spill] sm:$0xff] %v2791_v50 }
 0x184   :  { %v530_v52 = vpop.f32.mrf.mxu0  ;;  %v550_v53 = vpop.f32.mrf.mxu1 }
 0x185   :  { %v593_v56 = vadd.f32 %v530_v52, %v109_v51  ;;  %v594_v34 = vadd.f32 %v550_v53, %v3732_v14 }
 0x187   :  { %v1702_v58 = vmul.f32 -1.442695, %v593_v56  ;;  %v1703_v13 = vmul.f32 -1.442695, %v594_v34 }
 0x189   :  { %1750 = vpow2.f32 %v1702_v58 }
 0x18a   :  { %1752 = vpow2.f32 %v1703_v13 }
 0x18b   :  { %v590_v35 = vpop.f32.mrf.mxu3  ;;  %v570_v61 = vpop.f32.mrf.mxu2 }
 0x18c   :  { %v596_v55 = vadd.f32 %v590_v35, %v3733_v0  ;;  %v595_v9 = vadd.f32 %v570_v61, %v3734_v15  ;;  %v2829_v15 = vld [vmem:[%s3551_s3 + $0x1c0] sm:$0xff] }
 0x18e   :  { %v1704_v59 = vmul.f32 -1.442695, %v596_v55 }
 0x18f   :  { %v1751_v6 = vpop.eup %1750 }
 0x190   :  { %v1753_v22 = vpop.eup %1752  ;;  %v603_v46 = vadd.f32 1.0, %v1751_v6  ;;  %1754 = vpow2.f32 %v1704_v59 }
 0x191   :  { %v604_v57 = vadd.f32 1.0, %v1753_v22 }
 0x192   :  { %1756 = vrcp.f32 %v603_v46  ;;  %v616_v25 = vand.u32 2147483648, %v603_v46  ;;  %v614_v29 = vand.u32 2147483647, %v603_v46  ;;  %vm610_vm15 = vweird.f32 %v603_v46 }
 0x193   :  { %1758 = vrcp.f32 %v604_v57  ;;  %v631_v26 = vand.u32 2147483648, %v604_v57  ;;  %v629_v33 = vand.u32 2147483647, %v604_v57  ;;  %vm625_vm0 = vweird.f32 %v604_v57 }
 0x194   :  { %v617_v40 = vor.u32 1.1754944e-38, %v616_v25  ;;  %vm615_vm3 = vcmp.eq.f32.partialorder %v614_v29, 8.507059e+37  ;;  %v2892_v25 = vld [vmem:[%s3551_s3 + $0x168] sm:$0xff]  ;;  %v2924_v29 = vld [vmem:[%s3551_s3 + $0x120] sm:$0xff] }
 0x195   :  { %v632_v48 = vor.u32 1.1754944e-38, %v631_v26  ;;  %vm630_vm4 = vcmp.eq.f32.partialorder %v629_v33, 8.507059e+37  ;;  %v2905_v26 = vld [vmem:[%s3551_s3 + $0x140] sm:$0xff] }
 0x196   :  { %v1755_v3 = vpop.eup %1754  ;;  %v2943_v33 = vld [vmem:[%s3551_s3 + $0x100] sm:$0xff] }
 0x197   :  { %v639_v1 = vadd.f32 1.0, %v1755_v3 }
 0x198   :  { %v1757_v54 = vpop.eup %1756 }
 0x199   :  { %v1759_v63 = vpop.eup %1758  ;;  %v606_v62 = vmul.f32 %v1757_v54, %v603_v46  ;;  %1760 = vrcp.f32 %v639_v1  ;;  %vm611_vm13 = vweird.f32 %v1757_v54  ;;  %v651_v59 = vand.u32 2147483648, %v639_v1 }
 0x19a   :  { %v621_v8 = vmul.f32 %v1759_v63, %v604_v57  ;;  %1762 = vtanh.f32 %v595_v9  ;;  %vm626_vm14 = vweird.f32 %v1759_v63  ;;  %vm612_vm1 = vmor %vm610_vm15, %vm611_vm13  ;;  %vm645_vm6 = vweird.f32 %v639_v1  ;;  %v2835_v9 = vld [vmem:[%s3551_s3 + $0x1c8] sm:$0xff] }
 0x19b   :  { %v607_v16 = vsub.f32 1.0, %v606_v62  ;;  %vm627_vm2 = vmor %vm625_vm0, %vm626_vm14  ;;  %v649_v6 = vand.u32 2147483647, %v639_v1  ;;  %v652_v46 = vor.u32 1.1754944e-38, %v651_v59  ;;  %v2854_v62 = vld [vmem:[%s3551_s3 + $0x1a8] sm:$0xff] }
 0x19c   :  { %v622_v24 = vsub.f32 1.0, %v621_v8  ;;  %v2867_v8 = vld [vmem:[%s3551_s3 + $0x180] sm:$0xff] }
 0x19d   :  { %v608_v28 = vmul.f32 %v1757_v54, %v607_v16  ;;  %vm650_vm8 = vcmp.eq.f32.partialorder %v649_v6, 8.507059e+37  ;;  %v2873_v16 = vld [vmem:[%s3551_s3 + $0x188] sm:$0xff] }
 0x19e   :  { %v623_v30 = vmul.f32 %v1759_v63, %v622_v24  ;;  %v2886_v24 = vld [vmem:[%s3551_s3 + $0x160] sm:$0xff] }
 0x19f   :  { %v1761_v36 = vpop.eup %1760  ;;  %v609_v39 = vadd.f32 %v1757_v54, %v608_v28  ;;  %v2911_v28 = vld [vmem:[%s3551_s3 + $0x148] sm:$0xff] }
 0x1a0   :  { %v624_v43 = vadd.f32 %v1759_v63, %v623_v30  ;;  %v641_v44 = vmul.f32 %v1761_v36, %v639_v1  ;;  %v1763_v52 = vpop.eup %1762  ;;  %vm646_vm5 = vweird.f32 %v1761_v36  ;;  %v2816_v1 = vld [vmem:[%s3551_s3 + $0x1e8] sm:$0xff] }
 0x1a1   :  { %v613_v51 = vsel %vm612_vm1, %v1757_v54, %v609_v39  ;;  %vm647_vm7 = vmor %vm645_vm6, %vm646_vm5  ;;  %v2823_v54 = vld [vmem:[%s3551_s3 + $0x1f8] sm:$0xff]  ;;  %v2930_v30 = vld [vmem:[%s3551_s3 + $0x128] sm:$0xff] }
 0x1a2   :  { %v618_v53 = vsel %vm615_vm3, %v617_v40, %v613_v51  ;;  %v628_v56 = vsel %vm627_vm2, %v1759_v63, %v624_v43  ;;  %v642_v14 = vsub.f32 1.0, %v641_v44  ;;  %v2848_v63 = vld [vmem:[%s3551_s3 + $0x1a0] sm:$0xff]  ;;  %v2968_v40 = vld [vmem:[%s3551_s3 + $0xe8] sm:$0xff] }
 0x1a3   :  { %v633_v34 = vsel %vm630_vm4, %v632_v48, %v628_v56  ;;  %v656_v58 = vmul.f32 %v1763_v52, %v618_v53  ;;  %v2962_v39 = vld [vmem:[%s3551_s3 + $0xe0] sm:$0xff]  ;;  %v2987_v44 = vld [vmem:[%s3551_s3 + $0xc8] sm:$0xff] }
 0x1a4   :  { %v655_v13 = vmul.f32 %v633_v34, %v2716_v2  ;;  %v643_v35 = vmul.f32 %v1761_v36, %v642_v14  ;;  %v2810_v2 = vld [vmem:[%s3551_s3 + $0x1e0] sm:$0xff]  ;;  %v3006_v51 = vld [vmem:[%s3551_s3 + $0xa8] sm:$0xff] }
 0x1a5   :  { %v2981_v43 = vld [vmem:[%s3551_s3 + $0xc0] sm:$0xff]  ;;  %3738 = vst [vmem:[#allocation5_spill] sm:$0xff] %v3006_v51  ;;  %v3025_v53 = vld [vmem:[%s3551_s3 + $0x88] sm:$0xff] }
 0x1a6   :  { %v2798_v0 = vadd.f32 %v656_v58, %v655_v13  ;;  %v644_v55 = vadd.f32 %v1761_v36, %v643_v35  ;;  %v3000_v48 = vld [vmem:[%s3551_s3 + $0xa0] sm:$0xff]  ;;  %3741 = vst [vmem:[#allocation14_spill] sm:$0xff] %v3025_v53  ;;  %v3044_v14 = vld [vmem:[%s3551_s3 + $0x68] sm:$0xff]  ;;  %v3751_v35 = vld [vmem:[#allocation35_spill] sm:$0xff] }
 0x1a7   :  { %3737 = vst [vmem:[#allocation10_spill] sm:$0xff] %v3000_v48  ;;  %v3019_v52 = vld [vmem:[%s3551_s3 + $0x80] sm:$0xff]  ;;  %v3058_v34 = vld [vmem:[%s3551_s3 + $0x48] sm:$0xff] }
 0x1a8   :  { %1764 = vtanh.f32 %v2798_v0  ;;  %v648_v22 = vsel %vm647_vm7, %v1761_v36, %v644_v55  ;;  %v2949_v36 = vld [vmem:[%s3551_s3 + $0x108] sm:$0xff]  ;;  %3740 = vst [vmem:[#allocation23_spill] sm:$0xff] %v3019_v52  ;;  %v3038_v56 = vld [vmem:[%s3551_s3 + $0x60] sm:$0xff] }
 0x1a9   :  { %v653_v61 = vsel %vm650_vm8, %v652_v46, %v648_v22  ;;  %3743 = vst [vmem:[#allocation11_spill] sm:$0xff] %v3038_v56  ;;  %v3752_v46 = vld [vmem:[#allocation41_spill] sm:$0xff] }
 0x1aa   :  { %3744 = vst [vmem:[#allocation24_spill] sm:$0xff] %v3044_v14 }
 0x1ab   :  { %3746 = vst [vmem:[#allocation9_spill] sm:$0xff] %v3058_v34 }
 0x1ae   :  { %v1765_v57 = vpop.eup %1764 }
 0x1af   :  { %v2801_v3 = vmul.f32 %v1765_v57, %v653_v61 }
 0x1b1   :  { %3735 = vst [vmem:[#allocation6_spill] sm:$0xff] %v2801_v3  ;;  %683 = vmatmul.f32.vlgmr.msra.gmra.mxu0 %v2801_v3  ;;  %703 = vmatmul.f32.vlgmr.msra.gmra.mxu1 %v2801_v3 }
 0x1b2   :  { %723 = vmatmul.f32.vlgmr.msra.gmra.mxu2 %v2801_v3  ;;  %743 = vmatmul.f32.vlgmr.msra.gmra.mxu3 %v2801_v3 }
 0x1b3   :  { %975 = vmatpush.msra.mxu0 %v2810_v2  ;;  %995 = vmatpush.msra.mxu1 %v2816_v1 }
 0x1b4   :  { %1015 = vmatpush.msra.mxu2 %v2375_v4  ;;  %1035 = vmatpush.msra.mxu3 %v2823_v54  ;;  %v2842_v4 = vld [vmem:[%s3551_s3 + $0x1d8] sm:$0xff] }
 0x1b5   :  { %976 = vmatpush.msra.mxu0 %v2829_v15  ;;  %996 = vmatpush.msra.mxu1 %v2835_v9 }
 0x1b6   :  { %1016 = vmatpush.msra.mxu2 %v2384_v5  ;;  %1036 = vmatpush.msra.mxu3 %v2842_v4  ;;  %v2861_v5 = vld [vmem:[%s3551_s3 + $0x1b8] sm:$0xff] }
 0x1b7   :  { %977 = vmatpush.msra.mxu0 %v2848_v63  ;;  %997 = vmatpush.msra.mxu1 %v2854_v62 }
 0x1b8   :  { %1017 = vmatpush.msra.mxu2 %v2402_v10  ;;  %1037 = vmatpush.msra.mxu3 %v2861_v5  ;;  %v2880_v10 = vld [vmem:[%s3551_s3 + $0x198] sm:$0xff] }
 0x1b9   :  { %978 = vmatpush.msra.mxu0 %v2867_v8  ;;  %998 = vmatpush.msra.mxu1 %v2873_v16 }
 0x1ba   :  { %1018 = vmatpush.msra.mxu2 %v2411_v11  ;;  %1038 = vmatpush.msra.mxu3 %v2880_v10  ;;  %v2899_v11 = vld [vmem:[%s3551_s3 + $0x178] sm:$0xff] }
 0x1bb   :  { %979 = vmatpush.msra.mxu0 %v2886_v24  ;;  %999 = vmatpush.msra.mxu1 %v2892_v25 }
 0x1bc   :  { %1019 = vmatpush.msra.mxu2 %v2425_v12  ;;  %1039 = vmatpush.msra.mxu3 %v2899_v11  ;;  %v2918_v12 = vld [vmem:[%s3551_s3 + $0x158] sm:$0xff] }
 0x1bd   :  { %980 = vmatpush.msra.mxu0 %v2905_v26  ;;  %1000 = vmatpush.msra.mxu1 %v2911_v28 }
 0x1be   :  { %1020 = vmatpush.msra.mxu2 %v2444_v17  ;;  %1040 = vmatpush.msra.mxu3 %v2918_v12  ;;  %v2937_v17 = vld [vmem:[%s3551_s3 + $0x138] sm:$0xff] }
 0x1bf   :  { %981 = vmatpush.msra.mxu0 %v2924_v29  ;;  %1001 = vmatpush.msra.mxu1 %v2930_v30 }
 0x1c0   :  { %1021 = vmatpush.msra.mxu2 %v2452_v18  ;;  %1041 = vmatpush.msra.mxu3 %v2937_v17  ;;  %v2956_v18 = vld [vmem:[%s3551_s3 + $0x118] sm:$0xff] }
 0x1c1   :  { %982 = vmatpush.msra.mxu0 %v2943_v33  ;;  %1002 = vmatpush.msra.mxu1 %v2949_v36 }
 0x1c2   :  { %1022 = vmatpush.msra.mxu2 %v2461_v20  ;;  %1042 = vmatpush.msra.mxu3 %v2956_v18  ;;  %v2975_v20 = vld [vmem:[%s3551_s3 + $0xf8] sm:$0xff] }
 0x1c3   :  { %983 = vmatpush.msra.mxu0 %v2962_v39  ;;  %1003 = vmatpush.msra.mxu1 %v2968_v40 }
 0x1c4   :  { %1023 = vmatpush.msra.mxu2 %v2474_v21  ;;  %1043 = vmatpush.msra.mxu3 %v2975_v20  ;;  %v2994_v21 = vld [vmem:[%s3551_s3 + $0xd8] sm:$0xff] }
 0x1c5   :  { %984 = vmatpush.msra.mxu0 %v2981_v43  ;;  %1004 = vmatpush.msra.mxu1 %v2987_v44  ;;  %3736 = vst [vmem:[#allocation22_spill] sm:$0xff] %v2994_v21 }
 0x1c6   :  { %1024 = vmatpush.msra.mxu2 %v2483_v23  ;;  %1044 = vmatpush.msra.mxu3 %v2994_v21  ;;  %v3013_v23 = vld [vmem:[%s3551_s3 + $0xb8] sm:$0xff] }
 0x1c7   :  { %985 = vmatpush.msra.mxu0 %v3000_v48  ;;  %1005 = vmatpush.msra.mxu1 %v3006_v51  ;;  %3739 = vst [vmem:[#allocation8_spill] sm:$0xff] %v3013_v23 }
 0x1c8   :  { %1025 = vmatpush.msra.mxu2 %v3709_v19  ;;  %1045 = vmatpush.msra.mxu3 %v3013_v23  ;;  %v3032_v19 = vld [vmem:[%s3551_s3 + $0x98] sm:$0xff] }
 0x1c9   :  { %986 = vmatpush.msra.mxu0 %v3019_v52  ;;  %1006 = vmatpush.msra.mxu1 %v3025_v53  ;;  %3742 = vst [vmem:[#allocation7_spill] sm:$0xff] %v3032_v19 }
 0x1ca   :  { %1026 = vmatpush.msra.mxu2 %v3713_v27  ;;  %1046 = vmatpush.msra.mxu3 %v3032_v19  ;;  %v3052_v27 = vld [vmem:[%s3551_s3 + $0x40] sm:$0xff] }
 0x1cb   :  { %987 = vmatpush.msra.mxu0 %v3038_v56  ;;  %1007 = vmatpush.msra.mxu1 %v3044_v14  ;;  %3745 = vst [vmem:[#allocation18_spill] sm:$0xff] %v3052_v27 }
 0x1cc   :  { %1027 = vmatpush.msra.mxu2 %v3717_v31  ;;  %1047 = vmatpush.msra.mxu3 %v3718_v32  ;;  %v3066_v31 = vld [vmem:[%s3551_s3 + $0x20] sm:$0xff]  ;;  %v3072_v32 = vld [vmem:[%s3551_s3 + $0x28] sm:$0xff] }
 0x1cd   :  { %988 = vmatpush.msra.mxu0 %v3052_v27  ;;  %1008 = vmatpush.msra.mxu1 %v3058_v34  ;;  %3747 = vst [vmem:[#allocation13_spill] sm:$0xff] %v3066_v31 }
 0x1ce   :  { %1028 = vmatpush.msra.mxu2 %v3721_v37  ;;  %1048 = vmatpush.msra.mxu3 %v3722_v38  ;;  %3748 = vst [vmem:[#allocation25_spill] sm:$0xff] %v3072_v32  ;;  %v3080_v37 = vld [vmem:[%s3551_s3] sm:$0xff]  ;;  %v3086_v38 = vld [vmem:[%s3551_s3 + $0x8] sm:$0xff] }
 0x1cf   :  { %989 = vmatpush.msra.mxu0 %v3066_v31  ;;  %1009 = vmatpush.msra.mxu1 %v3072_v32  ;;  %3749 = vst [vmem:[#allocation19_spill] sm:$0xff] %v3080_v37 }
 0x1d0   :  { %1029 = vmatpush.msra.mxu2 %v3725_v41  ;;  %1049 = vmatpush.msra.mxu3 %v3726_v42  ;;  %3750 = vst [vmem:[#allocation12_spill] sm:$0xff] %v3086_v38  ;;  %v112_v41 = vadd.f32 %v2789_v49, %v2696_v7 }
 0x1d1   :  { %990 = vmatpush.msra.mxu0 %v3080_v37  ;;  %1010 = vmatpush.msra.mxu1 %v3086_v38 }
 0x1d2   :  { %1030 = vmatpush.msra.mxu2 %v3729_v45  ;;  %1050 = vmatpush.msra.mxu3 %v3730_v47 }
 0x22e   :  { %v684_v42 = vpop.f32.mrf.mxu0  ;;  %v704_v58 = vpop.f32.mrf.mxu1 }
 0x22f   :  { %v747_v13 = vadd.f32 %v684_v42, %v112_v41  ;;  %v748_v55 = vadd.f32 %v704_v58, %v3751_v35  ;;  %v3753_v58 = vld [vmem:[#allocation34_spill] sm:$0xff] }
 0x231   :  { %v1705_v59 = vmul.f32 -1.442695, %v747_v13  ;;  %v1706_v6 = vmul.f32 -1.442695, %v748_v55 }
 0x233   :  { %1766 = vpow2.f32 %v1705_v59 }
 0x234   :  { %1768 = vpow2.f32 %v1706_v6 }
 0x235   :  { %v744_v22 = vpop.f32.mrf.mxu3  ;;  %v724_v49 = vpop.f32.mrf.mxu2 }
 0x236   :  { %v750_v57 = vadd.f32 %v744_v22, %v3752_v46  ;;  %v749_v13 = vadd.f32 %v724_v49, %v3753_v58 }
 0x238   :  { %v1707_v61 = vmul.f32 -1.442695, %v750_v57 }
 0x239   :  { %v1767_v3 = vpop.eup %1766 }
 0x23a   :  { %v1769_v45 = vpop.eup %1768  ;;  %v757_v60 = vadd.f32 1.0, %v1767_v3  ;;  %1770 = vpow2.f32 %v1707_v61 }
 0x23b   :  { %v758_v47 = vadd.f32 1.0, %v1769_v45 }
 0x23c   :  { %1772 = vrcp.f32 %v757_v60  ;;  %v770_v46 = vand.u32 2147483648, %v757_v60  ;;  %v768_v61 = vand.u32 2147483647, %v757_v60  ;;  %vm764_vm11 = vweird.f32 %v757_v60 }
 0x23d   :  { %1774 = vrcp.f32 %v758_v47  ;;  %v785_v57 = vand.u32 2147483648, %v758_v47  ;;  %v783_v7 = vand.u32 2147483647, %v758_v47  ;;  %vm779_vm12 = vweird.f32 %v758_v47 }
 0x23e   :  { %v771_v49 = vor.u32 1.1754944e-38, %v770_v46  ;;  %vm769_vm15 = vcmp.eq.f32.partialorder %v768_v61, 8.507059e+37 }
 0x23f   :  { %vm784_vm0 = vcmp.eq.f32.partialorder %v783_v7, 8.507059e+37 }
 0x240   :  { %v1771_v50 = vpop.eup %1770 }
 0x241   :  { %v793_v41 = vadd.f32 1.0, %v1771_v50 }
 0x242   :  { %v1773_v42 = vpop.eup %1772 }
 0x243   :  { %v1775_v35 = vpop.eup %1774  ;;  %v760_v55 = vmul.f32 %v1773_v42, %v757_v60  ;;  %1776 = vrcp.f32 %v793_v41  ;;  %vm765_vm9 = vweird.f32 %v1773_v42  ;;  %v805_v46 = vand.u32 2147483648, %v793_v41 }
 0x244   :  { %v775_v59 = vmul.f32 %v1775_v35, %v758_v47  ;;  %1778 = vtanh.f32 %v749_v13  ;;  %vm780_vm10 = vweird.f32 %v1775_v35  ;;  %vm766_vm13 = vmor %vm764_vm11, %vm765_vm9  ;;  %vm799_vm2 = vweird.f32 %v793_v41 }
 0x245   :  { %v761_v6 = vsub.f32 1.0, %v760_v55  ;;  %vm781_vm14 = vmor %vm779_vm12, %vm780_vm10  ;;  %v786_v55 = vor.u32 1.1754944e-38, %v785_v57  ;;  %v806_v61 = vor.u32 1.1754944e-38, %v805_v46  ;;  %v3764_v46 = vld [vmem:[#allocation13_spill] sm:$0xff] }
 0x246   :  { %v776_v22 = vsub.f32 1.0, %v775_v59 }
 0x247   :  { %v762_v3 = vmul.f32 %v1773_v42, %v761_v6 }
 0x248   :  { %v777_v45 = vmul.f32 %v1775_v35, %v776_v22 }
 0x249   :  { %v1777_v38 = vpop.eup %1776  ;;  %v763_v50 = vadd.f32 %v1773_v42, %v762_v3 }
 0x24a   :  { %v778_v58 = vadd.f32 %v1775_v35, %v777_v45  ;;  %v795_v37 = vmul.f32 %v1777_v38, %v793_v41  ;;  %v1779_v13 = vpop.eup %1778  ;;  %vm800_vm1 = vweird.f32 %v1777_v38  ;;  %v3174_v45 = vld [vmem:[%s3551_s3 + $0x110] sm:$0xff] }
 0x24b   :  { %v767_v59 = vsel %vm766_vm13, %v1773_v42, %v763_v50  ;;  %v803_v42 = vand.u32 2147483647, %v793_v41  ;;  %vm801_vm3 = vmor %vm799_vm2, %vm800_vm1  ;;  %v3165_v41 = vld [vmem:[%s3551_s3 + $0x130] sm:$0xff] }
 0x24c   :  { %v772_v32 = vsel %vm769_vm15, %v771_v49, %v767_v59  ;;  %v782_v6 = vsel %vm781_vm14, %v1775_v35, %v778_v58  ;;  %v796_v31 = vsub.f32 1.0, %v795_v37  ;;  %v3183_v50 = vld [vmem:[%s3551_s3 + $0xf0] sm:$0xff] }
 0x24d   :  { %v787_v22 = vsel %vm784_vm0, %v786_v55, %v782_v6  ;;  %v810_v34 = vmul.f32 %v1779_v13, %v772_v32  ;;  %vm804_vm4 = vcmp.eq.f32.partialorder %v803_v42, 8.507059e+37  ;;  %v3147_v32 = vld [vmem:[%s3551_s3 + $0x170] sm:$0xff]  ;;  %v3225_v13 = vld [vmem:[%s3551_s3 + $0x78] sm:$0xff]  ;;  %v3765_v42 = vld [vmem:[#allocation25_spill] sm:$0xff] }
 0x24e   :  { %v809_v27 = vmul.f32 %v787_v22, %v2798_v0  ;;  %v797_v3 = vmul.f32 %v1777_v38, %v796_v31  ;;  %v3111_v0 = vld [vmem:[%s3551_s3 + $0x1f0] sm:$0xff]  ;;  %3759 = vst [vmem:[#allocation27_spill] sm:$0xff] %v3225_v13  ;;  %v3761_v22 = vld [vmem:[#allocation9_spill] sm:$0xff] }
 0x24f   :  { %v3138_v31 = vld [vmem:[%s3551_s3 + $0x190] sm:$0xff] }
 0x250   :  { %v3097_v60 = vadd.f32 %v810_v34, %v809_v27  ;;  %v798_v47 = vadd.f32 %v1777_v38, %v797_v3  ;;  %v3120_v27 = vld [vmem:[%s3551_s3 + $0x1d0] sm:$0xff] }
 0x251   :  { %v3129_v34 = vld [vmem:[%s3551_s3 + $0x1b0] sm:$0xff] }
 0x252   :  { %1780 = vtanh.f32 %v3097_v60  ;;  %v802_v57 = vsel %vm801_vm3, %v1777_v38, %v798_v47  ;;  %v3156_v38 = vld [vmem:[%s3551_s3 + $0x150] sm:$0xff]  ;;  %v3239_v47 = vld [vmem:[%s3551_s3 + $0x58] sm:$0xff] }
 0x253   :  { %v807_v37 = vsel %vm804_vm4, %v806_v61, %v802_v57  ;;  %v3192_v49 = vld [vmem:[%s3551_s3 + $0xd0] sm:$0xff]  ;;  %3763 = vst [vmem:[#allocation32_spill] sm:$0xff] %v3239_v47  ;;  %v3253_v61 = vld [vmem:[%s3551_s3 + $0x38] sm:$0xff] }
 0x254   :  { %3755 = vst [vmem:[#allocation26_spill] sm:$0xff] %v3192_v49  ;;  %v3201_v58 = vld [vmem:[%s3551_s3 + $0xb0] sm:$0xff] }
 0x255   :  { %3756 = vst [vmem:[#allocation20_spill] sm:$0xff] %v3201_v58  ;;  %v3210_v55 = vld [vmem:[%s3551_s3 + $0x90] sm:$0xff] }
 0x256   :  { %3757 = vst [vmem:[#allocation16_spill] sm:$0xff] %v3210_v55  ;;  %v3219_v59 = vld [vmem:[%s3551_s3 + $0x70] sm:$0xff] }
 0x257   :  { %3758 = vst [vmem:[#allocation17_spill] sm:$0xff] %v3219_v59  ;;  %v3760_v6 = vld [vmem:[#allocation18_spill] sm:$0xff] }
 0x258   :  { %v1781_v7 = vpop.eup %1780  ;;  %v3233_v3 = vld [vmem:[%s3551_s3 + $0x50] sm:$0xff]  ;;  %3767 = vst [vmem:[#allocation31_spill] sm:$0xff] %v3253_v61 }
 0x259   :  { %v3100_v35 = vmul.f32 %v1781_v7, %v807_v37  ;;  %3762 = vst [vmem:[#allocation21_spill] sm:$0xff] %v3233_v3  ;;  %v3247_v57 = vld [vmem:[%s3551_s3 + $0x30] sm:$0xff]  ;;  %v3768_v7 = vld [vmem:[#allocation19_spill] sm:$0xff]  ;;  %v3769_v37 = vld [vmem:[#allocation12_spill] sm:$0xff] }
 0x25a   :  { %3766 = vst [vmem:[#allocation38_spill] sm:$0xff] %v3247_v57 }
 0x25b   :  { %3754 = vst [vmem:[#allocation15_spill] sm:$0xff] %v3100_v35  ;;  %837 = vmatmul.f32.vlgmr.msrb.gmra.mxu0 %v3100_v35  ;;  %857 = vmatmul.f32.vlgmr.msrb.gmra.mxu1 %v3100_v35 }
 0x25c   :  { %877 = vmatmul.f32.vlgmr.msrb.gmra.mxu2 %v3100_v35  ;;  %897 = vmatmul.f32.vlgmr.msrb.gmra.mxu3 %v3100_v35  ;;  %v3261_v35 = vld [vmem:[%s3551_s3 + $0x10] sm:$0xff] }
 0x25d   :  { %1129 = vmatpush.msrb.mxu0 %v2810_v2  ;;  %1149 = vmatpush.msrb.mxu1 %v2816_v1  ;;  %3770 = vst [vmem:[#allocation35_spill] sm:$0xff] %v3261_v35 }
 0x25e   :  { %1169 = vmatpush.msrb.mxu2 %v3111_v0  ;;  %1189 = vmatpush.msrb.mxu3 %v2823_v54 }
 0x25f   :  { %1130 = vmatpush.msrb.mxu0 %v2829_v15  ;;  %1150 = vmatpush.msrb.mxu1 %v2835_v9 }
 0x260   :  { %1170 = vmatpush.msrb.mxu2 %v3120_v27  ;;  %1190 = vmatpush.msrb.mxu3 %v2842_v4 }
 0x261   :  { %1131 = vmatpush.msrb.mxu0 %v2848_v63  ;;  %1151 = vmatpush.msrb.mxu1 %v2854_v62 }
 0x262   :  { %1171 = vmatpush.msrb.mxu2 %v3129_v34  ;;  %1191 = vmatpush.msrb.mxu3 %v2861_v5 }
 0x263   :  { %1132 = vmatpush.msrb.mxu0 %v2867_v8  ;;  %1152 = vmatpush.msrb.mxu1 %v2873_v16 }
 0x264   :  { %1172 = vmatpush.msrb.mxu2 %v3138_v31  ;;  %1192 = vmatpush.msrb.mxu3 %v2880_v10 }
 0x265   :  { %1133 = vmatpush.msrb.mxu0 %v2886_v24  ;;  %1153 = vmatpush.msrb.mxu1 %v2892_v25 }
 0x266   :  { %1173 = vmatpush.msrb.mxu2 %v3147_v32  ;;  %1193 = vmatpush.msrb.mxu3 %v2899_v11 }
 0x267   :  { %1134 = vmatpush.msrb.mxu0 %v2905_v26  ;;  %1154 = vmatpush.msrb.mxu1 %v2911_v28 }
 0x268   :  { %1174 = vmatpush.msrb.mxu2 %v3156_v38  ;;  %1194 = vmatpush.msrb.mxu3 %v2918_v12 }
 0x269   :  { %1135 = vmatpush.msrb.mxu0 %v2924_v29  ;;  %1155 = vmatpush.msrb.mxu1 %v2930_v30 }
 0x26a   :  { %1175 = vmatpush.msrb.mxu2 %v3165_v41  ;;  %1195 = vmatpush.msrb.mxu3 %v2937_v17 }
 0x26b   :  { %1136 = vmatpush.msrb.mxu0 %v2943_v33  ;;  %1156 = vmatpush.msrb.mxu1 %v2949_v36 }
 0x26c   :  { %1176 = vmatpush.msrb.mxu2 %v3174_v45  ;;  %1196 = vmatpush.msrb.mxu3 %v2956_v18 }
 0x26d   :  { %1137 = vmatpush.msrb.mxu0 %v2962_v39  ;;  %1157 = vmatpush.msrb.mxu1 %v2968_v40 }
 0x26e   :  { %1177 = vmatpush.msrb.mxu2 %v3183_v50  ;;  %1197 = vmatpush.msrb.mxu3 %v2975_v20 }
 0x26f   :  { %1138 = vmatpush.msrb.mxu0 %v2981_v43  ;;  %1158 = vmatpush.msrb.mxu1 %v2987_v44 }
 0x270   :  { %1178 = vmatpush.msrb.mxu2 %v3192_v49  ;;  %1198 = vmatpush.msrb.mxu3 %v2994_v21 }
 0x271   :  { %1139 = vmatpush.msrb.mxu0 %v3000_v48  ;;  %1159 = vmatpush.msrb.mxu1 %v3006_v51 }
 0x272   :  { %1179 = vmatpush.msrb.mxu2 %v3201_v58  ;;  %1199 = vmatpush.msrb.mxu3 %v3013_v23 }
 0x273   :  { %1140 = vmatpush.msrb.mxu0 %v3019_v52  ;;  %1160 = vmatpush.msrb.mxu1 %v3025_v53 }
 0x274   :  { %1180 = vmatpush.msrb.mxu2 %v3210_v55  ;;  %1200 = vmatpush.msrb.mxu3 %v3032_v19 }
 0x275   :  { %1141 = vmatpush.msrb.mxu0 %v3038_v56  ;;  %1161 = vmatpush.msrb.mxu1 %v3044_v14 }
 0x276   :  { %1181 = vmatpush.msrb.mxu2 %v3219_v59  ;;  %1201 = vmatpush.msrb.mxu3 %v3225_v13  ;;  %v3775_v59 = vld [vmem:[#allocation44_spill] sm:$0xff] }
 0x277   :  { %1142 = vmatpush.msrb.mxu0 %v3760_v6  ;;  %1162 = vmatpush.msrb.mxu1 %v3761_v22 }
 0x278   :  { %1182 = vmatpush.msrb.mxu2 %v3233_v3  ;;  %1202 = vmatpush.msrb.mxu3 %v3239_v47  ;;  %v3774_v3 = vld [vmem:[#allocation37_spill] sm:$0xff] }
 0x279   :  { %1143 = vmatpush.msrb.mxu0 %v3764_v46  ;;  %1163 = vmatpush.msrb.mxu1 %v3765_v42  ;;  %v3772_v42 = vld [vmem:[#allocation50_spill] sm:$0xff] }
 0x27a   :  { %1183 = vmatpush.msrb.mxu2 %v3247_v57  ;;  %1203 = vmatpush.msrb.mxu3 %v3253_v61  ;;  %v3267_v57 = vld [vmem:[%s3551_s3 + $0x18] sm:$0xff]  ;;  %v3773_v61 = vld [vmem:[#allocation4_spill] sm:$0xff] }
 0x27b   :  { %1144 = vmatpush.msrb.mxu0 %v3768_v7  ;;  %1164 = vmatpush.msrb.mxu1 %v3769_v37  ;;  %3771 = vst [vmem:[#allocation41_spill] sm:$0xff] %v3267_v57  ;;  %v115_v46 = vadd.f32 %v3773_v61, %v3772_v42 }
 0x27c   :  { %1184 = vmatpush.msrb.mxu2 %v3261_v35  ;;  %1204 = vmatpush.msrb.mxu3 %v3267_v57 }
 0x2d8   :  { %v838_v7 = vpop.f32.mrf.mxu0  ;;  %v858_v47 = vpop.f32.mrf.mxu1 }
 0x2d9   :  { %v901_v37 = vadd.f32 %v838_v7, %v115_v46  ;;  %v902_v22 = vadd.f32 %v858_v47, %v3774_v3  ;;  %v3776_v3 = vld [vmem:[#allocation36_spill] sm:$0xff] }
 0x2db   :  { %v1708_v6 = vmul.f32 -1.442695, %v901_v37  ;;  %v1709_v13 = vmul.f32 -1.442695, %v902_v22 }
 0x2dd   :  { %1782 = vpow2.f32 %v1708_v6 }
 0x2de   :  { %1784 = vpow2.f32 %v1709_v13 }
 0x2df   :  { %v898_v35 = vpop.f32.mrf.mxu3  ;;  %v878_v61 = vpop.f32.mrf.mxu2 }
 0x2e0   :  { %v904_v14 = vadd.f32 %v898_v35, %v3775_v59  ;;  %v903_v47 = vadd.f32 %v878_v61, %v3776_v3 }
 0x2e2   :  { %v1710_v56 = vmul.f32 -1.442695, %v904_v14 }
 0x2e3   :  { %v1783_v19 = vpop.eup %1782 }
 0x2e4   :  { %v1785_v55 = vpop.eup %1784  ;;  %v911_v53 = vadd.f32 1.0, %v1783_v19  ;;  %1786 = vpow2.f32 %v1710_v56 }
 0x2e5   :  { %v912_v57 = vadd.f32 1.0, %v1785_v55 }
 0x2e6   :  { %1788 = vrcp.f32 %v911_v53  ;;  %v924_v14 = vand.u32 2147483648, %v911_v53  ;;  %v922_v56 = vand.u32 2147483647, %v911_v53  ;;  %vm918_vm7 = vweird.f32 %v911_v53 }
 0x2e7   :  { %1790 = vrcp.f32 %v912_v57  ;;  %v939_v59 = vand.u32 2147483648, %v912_v57  ;;  %v937_v52 = vand.u32 2147483647, %v912_v57  ;;  %vm933_vm8 = vweird.f32 %v912_v57 }
 0x2e8   :  { %v925_v61 = vor.u32 1.1754944e-38, %v924_v14  ;;  %vm923_vm11 = vcmp.eq.f32.partialorder %v922_v56, 8.507059e+37 }
 0x2e9   :  { %vm938_vm12 = vcmp.eq.f32.partialorder %v937_v52, 8.507059e+37 }
 0x2ea   :  { %v1787_v42 = vpop.eup %1786 }
 0x2eb   :  { %v947_v46 = vadd.f32 1.0, %v1787_v42 }
 0x2ec   :  { %v1789_v7 = vpop.eup %1788 }
 0x2ed   :  { %v1791_v22 = vpop.eup %1790  ;;  %v914_v6 = vmul.f32 %v1789_v7, %v911_v53  ;;  %1792 = vrcp.f32 %v947_v46  ;;  %vm919_vm5 = vweird.f32 %v1789_v7  ;;  %v959_v14 = vand.u32 2147483648, %v947_v46 }
 0x2ee   :  { %v929_v13 = vmul.f32 %v1791_v22, %v912_v57  ;;  %1794 = vtanh.f32 %v903_v47  ;;  %vm934_vm6 = vweird.f32 %v1791_v22  ;;  %vm920_vm9 = vmor %vm918_vm7, %vm919_vm5  ;;  %vm953_vm14 = vweird.f32 %v947_v46 }
 0x2ef   :  { %v915_v37 = vsub.f32 1.0, %v914_v6  ;;  %vm935_vm10 = vmor %vm933_vm8, %vm934_vm6  ;;  %v940_v6 = vor.u32 1.1754944e-38, %v939_v59  ;;  %v960_v56 = vor.u32 1.1754944e-38, %v959_v14  ;;  %v3796_v14 = vld [vmem:[#allocation13_spill] sm:$0xff] }
 0x2f0   :  { %v930_v35 = vsub.f32 1.0, %v929_v13 }
 0x2f1   :  { %v916_v19 = vmul.f32 %v1789_v7, %v915_v37 }
 0x2f2   :  { %v931_v55 = vmul.f32 %v1791_v22, %v930_v35 }
 0x2f3   :  { %v1793_v23 = vpop.eup %1792  ;;  %v917_v42 = vadd.f32 %v1789_v7, %v916_v19 }
 0x2f4   :  { %v932_v3 = vadd.f32 %v1791_v22, %v931_v55  ;;  %v949_v58 = vmul.f32 %v1793_v23, %v947_v46  ;;  %v1795_v47 = vpop.eup %1794  ;;  %vm954_vm13 = vweird.f32 %v1793_v23  ;;  %v3785_v55 = vld [vmem:[#allocation14_spill] sm:$0xff] }
 0x2f5   :  { %v921_v13 = vsel %vm920_vm9, %v1789_v7, %v917_v42  ;;  %v957_v7 = vand.u32 2147483647, %v947_v46  ;;  %vm955_vm15 = vmor %vm953_vm14, %vm954_vm13  ;;  %v3784_v46 = vld [vmem:[#allocation23_spill] sm:$0xff]  ;;  %v3786_v42 = vld [vmem:[#allocation16_spill] sm:$0xff] }
 0x2f6   :  { %v926_v51 = vsel %vm923_vm11, %v925_v61, %v921_v13  ;;  %v936_v37 = vsel %vm935_vm10, %v1791_v22, %v932_v3  ;;  %v950_v48 = vsub.f32 1.0, %v949_v58  ;;  %v3787_v61 = vld [vmem:[#allocation7_spill] sm:$0xff]  ;;  %v3790_v13 = vld [vmem:[#allocation17_spill] sm:$0xff] }
 0x2f7   :  { %v941_v35 = vsel %vm938_vm12, %v940_v6, %v936_v37  ;;  %v964_v21 = vmul.f32 %v1795_v47, %v926_v51  ;;  %vm958_vm0 = vcmp.eq.f32.partialorder %v957_v7, 8.507059e+37  ;;  %v3780_v51 = vld [vmem:[#allocation10_spill] sm:$0xff]  ;;  %v3788_v3 = vld [vmem:[#allocation11_spill] sm:$0xff]  ;;  %v3789_v6 = vld [vmem:[#allocation24_spill] sm:$0xff] }
 0x2f8   :  { %v963_v49 = vmul.f32 %v941_v35, %v3097_v60  ;;  %v951_v19 = vmul.f32 %v1793_v23, %v950_v48  ;;  %v3779_v48 = vld [vmem:[#allocation22_spill] sm:$0xff]  ;;  %v3782_v60 = vld [vmem:[#allocation20_spill] sm:$0xff]  ;;  %v3791_v47 = vld [vmem:[#allocation27_spill] sm:$0xff] }
 0x2f9   :  { %v3792_v37 = vld [vmem:[#allocation18_spill] sm:$0xff]  ;;  %v3793_v35 = vld [vmem:[#allocation9_spill] sm:$0xff] }
 0x2fa   :  { %v3276_v53 = vadd.f32 %v964_v21, %v963_v49  ;;  %v952_v57 = vadd.f32 %v1793_v23, %v951_v19  ;;  %v3778_v21 = vld [vmem:[#allocation26_spill] sm:$0xff]  ;;  %v3783_v49 = vld [vmem:[#allocation8_spill] sm:$0xff]  ;;  %v3794_v19 = vld [vmem:[#allocation21_spill] sm:$0xff] }
 0x2fb   :  { %v3797_v7 = vld [vmem:[#allocation25_spill] sm:$0xff] }
 0x2fc   :  { %1796 = vtanh.f32 %v3276_v53  ;;  %v956_v59 = vsel %vm955_vm15, %v1793_v23, %v952_v57  ;;  %v3781_v23 = vld [vmem:[#allocation5_spill] sm:$0xff]  ;;  %v3795_v57 = vld [vmem:[#allocation32_spill] sm:$0xff] }
 0x2fd   :  { %v961_v58 = vsel %vm958_vm0, %v960_v56, %v956_v59  ;;  %v3798_v59 = vld [vmem:[#allocation38_spill] sm:$0xff]  ;;  %v3799_v56 = vld [vmem:[#allocation31_spill] sm:$0xff] }
 0x302   :  { %v1797_v52 = vpop.eup %1796 }
 0x303   :  { %v3279_v22 = vmul.f32 %v1797_v52, %v961_v58  ;;  %v3800_v52 = vld [vmem:[#allocation19_spill] sm:$0xff]  ;;  %v3801_v58 = vld [vmem:[#allocation12_spill] sm:$0xff] }
 0x305   :  { %3777 = vst [vmem:[#allocation34_spill] sm:$0xff] %v3279_v22  ;;  %991 = vmatmul.f32.vlgmr.msra.gmra.mxu0 %v3279_v22  ;;  %1011 = vmatmul.f32.vlgmr.msra.gmra.mxu1 %v3279_v22 }
 0x306   :  { %1031 = vmatmul.f32.vlgmr.msra.gmra.mxu2 %v3279_v22  ;;  %1051 = vmatmul.f32.vlgmr.msra.gmra.mxu3 %v3279_v22  ;;  %v3802_v22 = vld [vmem:[#allocation35_spill] sm:$0xff] }
 0x307   :  { %1283 = vmatpush.msra.mxu0 %v2810_v2  ;;  %1303 = vmatpush.msra.mxu1 %v2816_v1 }
 0x308   :  { %1323 = vmatpush.msra.mxu2 %v3111_v0  ;;  %1343 = vmatpush.msra.mxu3 %v2823_v54 }
 0x309   :  { %1284 = vmatpush.msra.mxu0 %v2829_v15  ;;  %1304 = vmatpush.msra.mxu1 %v2835_v9 }
 0x30a   :  { %1324 = vmatpush.msra.mxu2 %v3120_v27  ;;  %1344 = vmatpush.msra.mxu3 %v2842_v4 }
 0x30b   :  { %1285 = vmatpush.msra.mxu0 %v2848_v63  ;;  %1305 = vmatpush.msra.mxu1 %v2854_v62 }
 0x30c   :  { %1325 = vmatpush.msra.mxu2 %v3129_v34  ;;  %1345 = vmatpush.msra.mxu3 %v2861_v5 }
 0x30d   :  { %1286 = vmatpush.msra.mxu0 %v2867_v8  ;;  %1306 = vmatpush.msra.mxu1 %v2873_v16 }
 0x30e   :  { %1326 = vmatpush.msra.mxu2 %v3138_v31  ;;  %1346 = vmatpush.msra.mxu3 %v2880_v10 }
 0x30f   :  { %1287 = vmatpush.msra.mxu0 %v2886_v24  ;;  %1307 = vmatpush.msra.mxu1 %v2892_v25 }
 0x310   :  { %1327 = vmatpush.msra.mxu2 %v3147_v32  ;;  %1347 = vmatpush.msra.mxu3 %v2899_v11 }
 0x311   :  { %1288 = vmatpush.msra.mxu0 %v2905_v26  ;;  %1308 = vmatpush.msra.mxu1 %v2911_v28 }
 0x312   :  { %1328 = vmatpush.msra.mxu2 %v3156_v38  ;;  %1348 = vmatpush.msra.mxu3 %v2918_v12 }
 0x313   :  { %1289 = vmatpush.msra.mxu0 %v2924_v29  ;;  %1309 = vmatpush.msra.mxu1 %v2930_v30 }
 0x314   :  { %1329 = vmatpush.msra.mxu2 %v3165_v41  ;;  %1349 = vmatpush.msra.mxu3 %v2937_v17 }
 0x315   :  { %1290 = vmatpush.msra.mxu0 %v2943_v33  ;;  %1310 = vmatpush.msra.mxu1 %v2949_v36 }
 0x316   :  { %1330 = vmatpush.msra.mxu2 %v3174_v45  ;;  %1350 = vmatpush.msra.mxu3 %v2956_v18 }
 0x317   :  { %1291 = vmatpush.msra.mxu0 %v2962_v39  ;;  %1311 = vmatpush.msra.mxu1 %v2968_v40 }
 0x318   :  { %1331 = vmatpush.msra.mxu2 %v3183_v50  ;;  %1351 = vmatpush.msra.mxu3 %v2975_v20 }
 0x319   :  { %1292 = vmatpush.msra.mxu0 %v2981_v43  ;;  %1312 = vmatpush.msra.mxu1 %v2987_v44 }
 0x31a   :  { %1332 = vmatpush.msra.mxu2 %v3778_v21  ;;  %1352 = vmatpush.msra.mxu3 %v3779_v48 }
 0x31b   :  { %1293 = vmatpush.msra.mxu0 %v3780_v51  ;;  %1313 = vmatpush.msra.mxu1 %v3781_v23 }
 0x31c   :  { %1333 = vmatpush.msra.mxu2 %v3782_v60  ;;  %1353 = vmatpush.msra.mxu3 %v3783_v49 }
 0x31d   :  { %1294 = vmatpush.msra.mxu0 %v3784_v46  ;;  %1314 = vmatpush.msra.mxu1 %v3785_v55 }
 0x31e   :  { %1334 = vmatpush.msra.mxu2 %v3786_v42  ;;  %1354 = vmatpush.msra.mxu3 %v3787_v61 }
 0x31f   :  { %1295 = vmatpush.msra.mxu0 %v3788_v3  ;;  %1315 = vmatpush.msra.mxu1 %v3789_v6  ;;  %v3806_v6 = vld [vmem:[#allocation40_spill] sm:$0xff] }
 0x320   :  { %1335 = vmatpush.msra.mxu2 %v3790_v13  ;;  %1355 = vmatpush.msra.mxu3 %v3791_v47 }
 0x321   :  { %1296 = vmatpush.msra.mxu0 %v3792_v37  ;;  %1316 = vmatpush.msra.mxu1 %v3793_v35  ;;  %v3803_v37 = vld [vmem:[#allocation41_spill] sm:$0xff]  ;;  %v3804_v35 = vld [vmem:[#allocation50_spill] sm:$0xff] }
 0x322   :  { %1336 = vmatpush.msra.mxu2 %v3794_v19  ;;  %1356 = vmatpush.msra.mxu3 %v3795_v57  ;;  %v3805_v19 = vld [vmem:[#allocation28_spill] sm:$0xff] }
 0x323   :  { %1297 = vmatpush.msra.mxu0 %v3796_v14  ;;  %1317 = vmatpush.msra.mxu1 %v3797_v7  ;;  %v118_v47 = vadd.f32 %v3805_v19, %v3804_v35 }
 0x324   :  { %1337 = vmatpush.msra.mxu2 %v3798_v59  ;;  %1357 = vmatpush.msra.mxu3 %v3799_v56 }
 0x325   :  { %1298 = vmatpush.msra.mxu0 %v3800_v52  ;;  %1318 = vmatpush.msra.mxu1 %v3801_v58  ;;  %v3807_v52 = vld [vmem:[#allocation47_spill] sm:$0xff] }
 0x326   :  { %1338 = vmatpush.msra.mxu2 %v3802_v22  ;;  %1358 = vmatpush.msra.mxu3 %v3803_v37 }
 0x382   :  { %v992_v57 = vpop.f32.mrf.mxu0  ;;  %v1012_v13 = vpop.f32.mrf.mxu1 }
 0x383   :  { %v1055_v14 = vadd.f32 %v992_v57, %v118_v47  ;;  %v1056_v7 = vadd.f32 %v1012_v13, %v3806_v6  ;;  %v3808_v6 = vld [vmem:[#allocation39_spill] sm:$0xff] }
 0x385   :  { %v1711_v3 = vmul.f32 -1.442695, %v1055_v14  ;;  %v1712_v59 = vmul.f32 -1.442695, %v1056_v7 }
 0x387   :  { %1798 = vpow2.f32 %v1711_v3 }
 0x388   :  { %1800 = vpow2.f32 %v1712_v59 }
 0x389   :  { %v1052_v56 = vpop.f32.mrf.mxu3  ;;  %v1032_v19 = vpop.f32.mrf.mxu2 }
 0x38a   :  { %v1058_v61 = vadd.f32 %v1052_v56, %v3807_v52  ;;  %v1057_v13 = vadd.f32 %v1032_v19, %v3808_v6 }
 0x38c   :  { %v1713_v58 = vmul.f32 -1.442695, %v1058_v61 }
 0x38d   :  { %v1799_v42 = vpop.eup %1798 }
 0x38e   :  { %v1801_v22 = vpop.eup %1800  ;;  %v1065_v55 = vadd.f32 1.0, %v1799_v42  ;;  %1802 = vpow2.f32 %v1713_v58 }
 0x38f   :  { %v1066_v37 = vadd.f32 1.0, %v1801_v22 }
 0x390   :  { %1804 = vrcp.f32 %v1065_v55  ;;  %v1078_v61 = vand.u32 2147483648, %v1065_v55  ;;  %v1076_v22 = vand.u32 2147483647, %v1065_v55  ;;  %vm1072_vm3 = vweird.f32 %v1065_v55 }
 0x391   :  { %1806 = vrcp.f32 %v1066_v37  ;;  %v1093_v52 = vand.u32 2147483648, %v1066_v37  ;;  %v1091_v46 = vand.u32 2147483647, %v1066_v37  ;;  %vm1087_vm4 = vweird.f32 %v1066_v37 }
 0x392   :  { %v1079_v19 = vor.u32 1.1754944e-38, %v1078_v61  ;;  %vm1077_vm7 = vcmp.eq.f32.partialorder %v1076_v22, 8.507059e+37 }
 0x393   :  { %vm1092_vm8 = vcmp.eq.f32.partialorder %v1091_v46, 8.507059e+37 }
 0x394   :  { %v1803_v35 = vpop.eup %1802 }
 0x395   :  { %v1101_v47 = vadd.f32 1.0, %v1803_v35 }
 0x396   :  { %v1805_v57 = vpop.eup %1804 }
 0x397   :  { %v1807_v14 = vpop.eup %1806  ;;  %v1068_v3 = vmul.f32 %v1805_v57, %v1065_v55  ;;  %1808 = vrcp.f32 %v1101_v47  ;;  %vm1073_vm1 = vweird.f32 %v1805_v57  ;;  %v1113_v61 = vand.u32 2147483648, %v1101_v47 }
 0x398   :  { %v1083_v7 = vmul.f32 %v1807_v14, %v1066_v37  ;;  %1810 = vtanh.f32 %v1057_v13  ;;  %vm1088_vm2 = vweird.f32 %v1807_v14  ;;  %vm1074_vm5 = vmor %vm1072_vm3, %vm1073_vm1  ;;  %vm1107_vm10 = vweird.f32 %v1101_v47 }
 0x399   :  { %v1069_v59 = vsub.f32 1.0, %v1068_v3  ;;  %vm1089_vm6 = vmor %vm1087_vm4, %vm1088_vm2  ;;  %v1094_v3 = vor.u32 1.1754944e-38, %v1093_v52  ;;  %v1114_v22 = vor.u32 1.1754944e-38, %v1113_v61 }
 0x39a   :  { %v1084_v56 = vsub.f32 1.0, %v1083_v7 }
 0x39b   :  { %v1070_v42 = vmul.f32 %v1805_v57, %v1069_v59 }
 0x39c   :  { %v1085_v58 = vmul.f32 %v1807_v14, %v1084_v56 }
 0x39d   :  { %v1809_v49 = vpop.eup %1808  ;;  %v1071_v35 = vadd.f32 %v1805_v57, %v1070_v42 }
 0x39e   :  { %v1086_v6 = vadd.f32 %v1807_v14, %v1085_v58  ;;  %v1103_v60 = vmul.f32 %v1809_v49, %v1101_v47  ;;  %v1811_v13 = vpop.eup %1810  ;;  %vm1108_vm9 = vweird.f32 %v1809_v49 }
 0x39f   :  { %v1075_v7 = vsel %vm1074_vm5, %v1805_v57, %v1071_v35  ;;  %v1111_v57 = vand.u32 2147483647, %v1101_v47  ;;  %vm1109_vm11 = vmor %vm1107_vm10, %vm1108_vm9 }
 0x3a0   :  { %v1080_v23 = vsel %vm1077_vm7, %v1079_v19, %v1075_v7  ;;  %v1090_v59 = vsel %vm1089_vm6, %v1807_v14, %v1086_v6  ;;  %v1104_v51 = vsub.f32 1.0, %v1103_v60  ;;  %v3839_v6 = vld [vmem:[#allocation42_spill] sm:$0xff] }
 0x3a1   :  { %v1095_v56 = vsel %vm1092_vm8, %v1094_v3, %v1090_v59  ;;  %v1118_v48 = vmul.f32 %v1811_v13, %v1080_v23  ;;  %vm1112_vm12 = vcmp.eq.f32.partialorder %v1111_v57, 8.507059e+37 }
 0x3a2   :  { %v1117_v21 = vmul.f32 %v1095_v56, %v3276_v53  ;;  %v1105_v42 = vmul.f32 %v1809_v49, %v1104_v51 }
 0x3a4   :  { %v3355_v55 = vadd.f32 %v1118_v48, %v1117_v21  ;;  %v1106_v37 = vadd.f32 %v1809_v49, %v1105_v42 }
 0x3a6   :  { %1812 = vtanh.f32 %v3355_v55  ;;  %v1110_v52 = vsel %vm1109_vm11, %v1809_v49, %v1106_v37 }
 0x3a7   :  { %v1115_v60 = vsel %vm1112_vm12, %v1114_v22, %v1110_v52 }
 0x3ac   :  { %v1813_v46 = vpop.eup %1812 }
 0x3ad   :  { %v3358_v14 = vmul.f32 %v1813_v46, %v1115_v60 }
 0x3af   :  { %1145 = vmatmul.f32.vlgmr.msrb.gmra.mxu0 %v3358_v14  ;;  %1165 = vmatmul.f32.vlgmr.msrb.gmra.mxu1 %v3358_v14 }
 0x3b0   :  { %1185 = vmatmul.f32.vlgmr.msrb.gmra.mxu2 %v3358_v14  ;;  %1205 = vmatmul.f32.vlgmr.msrb.gmra.mxu3 %v3358_v14 }
 0x3b1   :  { %1437 = vmatpush.msrb.mxu0 %v2810_v2  ;;  %1457 = vmatpush.msrb.mxu1 %v2816_v1  ;;  %v3809_v2 = vld [vmem:[#allocation26_spill] sm:$0xff] }
 0x3b2   :  { %1477 = vmatpush.msrb.mxu2 %v3111_v0  ;;  %1497 = vmatpush.msrb.mxu3 %v2823_v54  ;;  %v3810_v1 = vld [vmem:[#allocation22_spill] sm:$0xff] }
 0x3b3   :  { %1438 = vmatpush.msrb.mxu0 %v2829_v15  ;;  %1458 = vmatpush.msrb.mxu1 %v2835_v9  ;;  %v3811_v54 = vld [vmem:[#allocation10_spill] sm:$0xff]  ;;  %v3812_v15 = vld [vmem:[#allocation5_spill] sm:$0xff]  ;;  %v3813_v9 = vld [vmem:[#allocation20_spill] sm:$0xff] }
 0x3b4   :  { %1478 = vmatpush.msrb.mxu2 %v3120_v27  ;;  %1498 = vmatpush.msrb.mxu3 %v2842_v4  ;;  %v3814_v4 = vld [vmem:[#allocation8_spill] sm:$0xff] }
 0x3b5   :  { %1439 = vmatpush.msrb.mxu0 %v2848_v63  ;;  %1459 = vmatpush.msrb.mxu1 %v2854_v62  ;;  %v3815_v63 = vld [vmem:[#allocation23_spill] sm:$0xff]  ;;  %v3816_v62 = vld [vmem:[#allocation14_spill] sm:$0xff] }
 0x3b6   :  { %1479 = vmatpush.msrb.mxu2 %v3129_v34  ;;  %1499 = vmatpush.msrb.mxu3 %v2861_v5  ;;  %v3817_v5 = vld [vmem:[#allocation16_spill] sm:$0xff] }
 0x3b7   :  { %1440 = vmatpush.msrb.mxu0 %v2867_v8  ;;  %1460 = vmatpush.msrb.mxu1 %v2873_v16  ;;  %v3818_v8 = vld [vmem:[#allocation7_spill] sm:$0xff] }
 0x3b8   :  { %1480 = vmatpush.msrb.mxu2 %v3138_v31  ;;  %1500 = vmatpush.msrb.mxu3 %v2880_v10  ;;  %v3819_v16 = vld [vmem:[#allocation11_spill] sm:$0xff]  ;;  %v3820_v10 = vld [vmem:[#allocation24_spill] sm:$0xff] }
 0x3b9   :  { %1441 = vmatpush.msrb.mxu0 %v2886_v24  ;;  %1461 = vmatpush.msrb.mxu1 %v2892_v25  ;;  %v3821_v24 = vld [vmem:[#allocation17_spill] sm:$0xff]  ;;  %v3822_v25 = vld [vmem:[#allocation27_spill] sm:$0xff] }
 0x3ba   :  { %1481 = vmatpush.msrb.mxu2 %v3147_v32  ;;  %1501 = vmatpush.msrb.mxu3 %v2899_v11  ;;  %v3823_v11 = vld [vmem:[#allocation18_spill] sm:$0xff]  ;;  %v3837_v31 = vld [vmem:[#allocation43_spill] sm:$0xff] }
 0x3bb   :  { %1442 = vmatpush.msrb.mxu0 %v2905_v26  ;;  %1462 = vmatpush.msrb.mxu1 %v2911_v28  ;;  %v3824_v26 = vld [vmem:[#allocation9_spill] sm:$0xff] }
 0x3bc   :  { %1482 = vmatpush.msrb.mxu2 %v3156_v38  ;;  %1502 = vmatpush.msrb.mxu3 %v2918_v12  ;;  %v3825_v28 = vld [vmem:[#allocation21_spill] sm:$0xff]  ;;  %v3826_v12 = vld [vmem:[#allocation32_spill] sm:$0xff] }
 0x3bd   :  { %1443 = vmatpush.msrb.mxu0 %v2924_v29  ;;  %1463 = vmatpush.msrb.mxu1 %v2930_v30  ;;  %v3827_v29 = vld [vmem:[#allocation13_spill] sm:$0xff] }
 0x3be   :  { %1483 = vmatpush.msrb.mxu2 %v3165_v41  ;;  %1503 = vmatpush.msrb.mxu3 %v2937_v17  ;;  %v3828_v30 = vld [vmem:[#allocation25_spill] sm:$0xff]  ;;  %v3829_v17 = vld [vmem:[#allocation38_spill] sm:$0xff] }
 0x3bf   :  { %1444 = vmatpush.msrb.mxu0 %v2943_v33  ;;  %1464 = vmatpush.msrb.mxu1 %v2949_v36  ;;  %v3830_v33 = vld [vmem:[#allocation31_spill] sm:$0xff] }
 0x3c0   :  { %1484 = vmatpush.msrb.mxu2 %v3174_v45  ;;  %1504 = vmatpush.msrb.mxu3 %v2956_v18  ;;  %v3831_v36 = vld [vmem:[#allocation19_spill] sm:$0xff]  ;;  %v3832_v18 = vld [vmem:[#allocation12_spill] sm:$0xff] }
 0x3c1   :  { %1445 = vmatpush.msrb.mxu0 %v2962_v39  ;;  %1465 = vmatpush.msrb.mxu1 %v2968_v40  ;;  %v3833_v39 = vld [vmem:[#allocation35_spill] sm:$0xff]  ;;  %v3834_v40 = vld [vmem:[#allocation41_spill] sm:$0xff] }
 0x3c2   :  { %1485 = vmatpush.msrb.mxu2 %v3183_v50  ;;  %1505 = vmatpush.msrb.mxu3 %v2975_v20  ;;  %v3835_v20 = vld [vmem:[#allocation50_spill] sm:$0xff]  ;;  %v3838_v50 = vld [vmem:[#allocation51_spill] sm:$0xff] }
 0x3c3   :  { %1446 = vmatpush.msrb.mxu0 %v2981_v43  ;;  %1466 = vmatpush.msrb.mxu1 %v2987_v44  ;;  %v3836_v43 = vld [vmem:[#allocation29_spill] sm:$0xff] }
 0x3c4   :  { %1486 = vmatpush.msrb.mxu2 %v3809_v2  ;;  %1506 = vmatpush.msrb.mxu3 %v3810_v1  ;;  %v121_v44 = vadd.f32 %v3836_v43, %v3835_v20  ;;  %v1605_v43 = vld [vmem:[%s3555_s6 + $0x58] sm:$0xff] }
 0x3c5   :  { %1447 = vmatpush.msrb.mxu0 %v3811_v54  ;;  %1467 = vmatpush.msrb.mxu1 %v3812_v15 }
 0x3c6   :  { %1487 = vmatpush.msrb.mxu2 %v3813_v9  ;;  %1507 = vmatpush.msrb.mxu3 %v3814_v4 }
 0x3c7   :  { %1448 = vmatpush.msrb.mxu0 %v3815_v63  ;;  %1468 = vmatpush.msrb.mxu1 %v3816_v62 }
 0x3c8   :  { %1488 = vmatpush.msrb.mxu2 %v3817_v5  ;;  %1508 = vmatpush.msrb.mxu3 %v3818_v8 }
 0x3c9   :  { %1449 = vmatpush.msrb.mxu0 %v3819_v16  ;;  %1469 = vmatpush.msrb.mxu1 %v3820_v10 }
 0x3ca   :  { %1489 = vmatpush.msrb.mxu2 %v3821_v24  ;;  %1509 = vmatpush.msrb.mxu3 %v3822_v25 }
 0x3cb   :  { %1450 = vmatpush.msrb.mxu0 %v3823_v11  ;;  %1470 = vmatpush.msrb.mxu1 %v3824_v26 }
 0x3cc   :  { %1490 = vmatpush.msrb.mxu2 %v3825_v28  ;;  %1510 = vmatpush.msrb.mxu3 %v3826_v12 }
 0x3cd   :  { %1451 = vmatpush.msrb.mxu0 %v3827_v29  ;;  %1471 = vmatpush.msrb.mxu1 %v3828_v30 }
 0x3ce   :  { %1491 = vmatpush.msrb.mxu2 %v3829_v17  ;;  %1511 = vmatpush.msrb.mxu3 %v3830_v33 }
 0x3cf   :  { %1452 = vmatpush.msrb.mxu0 %v3831_v36  ;;  %1472 = vmatpush.msrb.mxu1 %v3832_v18  ;;  %v1608_v18 = vld [vmem:[%s3555_s6 + $0x70] sm:$0xff] }
 0x3d0   :  { %1492 = vmatpush.msrb.mxu2 %v3833_v39  ;;  %1512 = vmatpush.msrb.mxu3 %v3834_v40  ;;  %v1607_v39 = vld [vmem:[%s3555_s6 + $0x68] sm:$0xff]  ;;  %v1606_v40 = vld [vmem:[%s3555_s6 + $0x60] sm:$0xff] }
 0x42c   :  { %v1146_v0 = vpop.f32.mrf.mxu0  ;;  %v1166_v27 = vpop.f32.mrf.mxu1 }
 0x42d   :  { %v1209_v34 = vadd.f32 %v1146_v0, %v121_v44  ;;  %v1210_v32 = vadd.f32 %v1166_v27, %v3837_v31  ;;  %v3840_v44 = vld [vmem:[#allocation30_spill] sm:$0xff] }
 0x42e   :  { %v124_v0 = vadd.f32 %v3840_v44, %v3835_v20  ;;  %v1604_v31 = vld [vmem:[%s3555_s6 + $0x50] sm:$0xff] }
 0x42f   :  { %v1714_v38 = vmul.f32 -1.442695, %v1209_v34  ;;  %v1715_v41 = vmul.f32 -1.442695, %v1210_v32 }
 0x431   :  { %1814 = vpow2.f32 %v1714_v38  ;;  %v3841_v38 = vld [vmem:[#allocation46_spill] sm:$0xff] }
 0x432   :  { %1816 = vpow2.f32 %v1715_v41 }
 0x433   :  { %v1206_v45 = vpop.f32.mrf.mxu3  ;;  %v1186_v47 = vpop.f32.mrf.mxu2 }
 0x434   :  { %v1212_v53 = vadd.f32 %v1206_v45, %v3838_v50  ;;  %v1211_v3 = vadd.f32 %v1186_v47, %v3839_v6  ;;  %v1603_v45 = vld [vmem:[%s3555_s6 + $0x48] sm:$0xff] }
 0x436   :  { %v1716_v21 = vmul.f32 -1.442695, %v1212_v53 }
 0x437   :  { %v1815_v48 = vpop.eup %1814 }
 0x438   :  { %v1817_v51 = vpop.eup %1816  ;;  %v1219_v23 = vadd.f32 1.0, %v1815_v48  ;;  %1818 = vpow2.f32 %v1716_v21  ;;  %v1602_v21 = vld [vmem:[%s3555_s6 + $0x40] sm:$0xff]  ;;  %v1601_v48 = vld [vmem:[%s3555_s6 + $0x38] sm:$0xff] }
 0x439   :  { %v1220_v49 = vadd.f32 1.0, %v1817_v51  ;;  %v1600_v51 = vld [vmem:[%s3555_s6 + $0x30] sm:$0xff] }
 0x43a   :  { %1820 = vrcp.f32 %v1219_v23  ;;  %v1232_v37 = vand.u32 2147483648, %v1219_v23  ;;  %v1230_v52 = vand.u32 2147483647, %v1219_v23  ;;  %vm1226_vm15 = vweird.f32 %v1219_v23 }
 0x43b   :  { %1822 = vrcp.f32 %v1220_v49  ;;  %v1247_v61 = vand.u32 2147483648, %v1220_v49  ;;  %v1245_v46 = vand.u32 2147483647, %v1220_v49  ;;  %vm1241_vm0 = vweird.f32 %v1220_v49 }
 0x43c   :  { %v1233_v1 = vor.u32 1.1754944e-38, %v1232_v37  ;;  %vm1231_vm3 = vcmp.eq.f32.partialorder %v1230_v52, 8.507059e+37 }
 0x43d   :  { %v1248_v9 = vor.u32 1.1754944e-38, %v1247_v61  ;;  %vm1246_vm4 = vcmp.eq.f32.partialorder %v1245_v46, 8.507059e+37  ;;  %v3843_v46 = vld [vmem:[#allocation45_spill] sm:$0xff] }
 0x43e   :  { %v1819_v58 = vpop.eup %1818 }
 0x43f   :  { %v1255_v35 = vadd.f32 1.0, %v1819_v58  ;;  %v1599_v58 = vld [vmem:[%s3555_s6 + $0x28] sm:$0xff] }
 0x440   :  { %v1821_v19 = vpop.eup %1820 }
 0x441   :  { %v1823_v7 = vpop.eup %1822  ;;  %v1222_v13 = vmul.f32 %v1821_v19, %v1219_v23  ;;  %1824 = vrcp.f32 %v1255_v35  ;;  %vm1227_vm13 = vweird.f32 %v1821_v19  ;;  %v1267_v28 = vand.u32 2147483648, %v1255_v35 }
 0x442   :  { %v1237_v59 = vmul.f32 %v1823_v7, %v1220_v49  ;;  %1826 = vtanh.f32 %v1211_v3  ;;  %vm1242_vm14 = vweird.f32 %v1823_v7  ;;  %vm1228_vm1 = vmor %vm1226_vm15, %vm1227_vm13  ;;  %vm1261_vm6 = vweird.f32 %v1255_v35  ;;  %v3842_v49 = vld [vmem:[#allocation52_spill] sm:$0xff] }
 0x443   :  { %v1223_v56 = vsub.f32 1.0, %v1222_v13  ;;  %vm1243_vm2 = vmor %vm1241_vm0, %vm1242_vm14  ;;  %v1265_v12 = vand.u32 2147483647, %v1255_v35  ;;  %v1268_v30 = vor.u32 1.1754944e-38, %v1267_v28 }
 0x444   :  { %v1238_v42 = vsub.f32 1.0, %v1237_v59  ;;  %v1597_v59 = vld [vmem:[%s3555_s6 + $0x18] sm:$0xff] }
 0x445   :  { %v1224_v57 = vmul.f32 %v1821_v19, %v1223_v56  ;;  %vm1266_vm8 = vcmp.eq.f32.partialorder %v1265_v12, 8.507059e+37  ;;  %v1596_v56 = vld [vmem:[%s3555_s6 + $0x10] sm:$0xff] }
 0x446   :  { %v1239_v22 = vmul.f32 %v1823_v7, %v1238_v42  ;;  %v1595_v42 = vld [vmem:[%s3555_s6 + $0x8] sm:$0xff] }
 0x447   :  { %v1825_v60 = vpop.eup %1824  ;;  %v1225_v2 = vadd.f32 %v1821_v19, %v1224_v57  ;;  %v1594_v57 = vld [vmem:[%s3555_s6] sm:$0xff] }
 0x448   :  { %v1240_v54 = vadd.f32 %v1823_v7, %v1239_v22  ;;  %v1257_v15 = vmul.f32 %v1825_v60, %v1255_v35  ;;  %v1827_v63 = vpop.eup %1826  ;;  %vm1262_vm5 = vweird.f32 %v1825_v60 }
 0x449   :  { %v1229_v4 = vsel %vm1228_vm1, %v1821_v19, %v1225_v2  ;;  %vm1263_vm7 = vmor %vm1261_vm6, %vm1262_vm5  ;;  %v1598_v19 = vld [vmem:[%s3555_s6 + $0x20] sm:$0xff] }
 0x44a   :  { %v1234_v62 = vsel %vm1231_vm3, %v1233_v1, %v1229_v4  ;;  %v1244_v5 = vsel %vm1243_vm2, %v1823_v7, %v1240_v54  ;;  %v1258_v8 = vsub.f32 1.0, %v1257_v15 }
 0x44b   :  { %v1249_v16 = vsel %vm1246_vm4, %v1248_v9, %v1244_v5  ;;  %v1272_v10 = vmul.f32 %v1827_v63, %v1234_v62 }
 0x44c   :  { %v1271_v24 = vmul.f32 %v1249_v16, %v3355_v55  ;;  %v1259_v25 = vmul.f32 %v1825_v60, %v1258_v8  ;;  %v1609_v55 = vld [vmem:[%s3555_s6 + $0x78] sm:$0xff] }
 0x44e   :  { %v3434_v11 = vadd.f32 %v1272_v10, %v1271_v24  ;;  %v1260_v26 = vadd.f32 %v1825_v60, %v1259_v25 }
 0x450   :  { %1828 = vtanh.f32 %v3434_v11  ;;  %v1264_v29 = vsel %vm1263_vm7, %v1825_v60, %v1260_v26 }
 0x451   :  { %v1269_v33 = vsel %vm1266_vm8, %v1268_v30, %v1264_v29 }
 0x456   :  { %v1829_v17 = vpop.eup %1828 }
 0x457   :  { %v3437_v36 = vmul.f32 %v1829_v17, %v1269_v33 }
 0x459   :  { %1299 = vmatmul.f32.vlgmr.msra.gmra.mxu0 %v3437_v36  ;;  %1319 = vmatmul.f32.vlgmr.msra.gmra.mxu1 %v3437_v36 }
 0x45a   :  { %1339 = vmatmul.f32.vlgmr.msra.gmra.mxu2 %v3437_v36  ;;  %1359 = vmatmul.f32.vlgmr.msra.gmra.mxu3 %v3437_v36 }
 0x45b   :  { %1614 = vmatpush.msra.mxu0 %v1609_v55 }
 0x45d   :  { %1615 = vmatpush.msra.mxu0 %v1608_v18 }
 0x45f   :  { %1616 = vmatpush.msra.mxu0 %v1607_v39 }
 0x461   :  { %1617 = vmatpush.msra.mxu0 %v1606_v40 }
 0x463   :  { %1618 = vmatpush.msra.mxu0 %v1605_v43 }
 0x465   :  { %1619 = vmatpush.msra.mxu0 %v1604_v31 }
 0x467   :  { %1620 = vmatpush.msra.mxu0 %v1603_v45 }
 0x469   :  { %1621 = vmatpush.msra.mxu0 %v1602_v21  ;;  %v3847_v21 = vld [vmem:[#allocation34_spill] sm:$0xff] }
 0x46b   :  { %1622 = vmatpush.msra.mxu0 %v1601_v48  ;;  %v3848_v48 = vld [vmem:[#allocation33_spill] sm:$0xff] }
 0x46d   :  { %1623 = vmatpush.msra.mxu0 %v1600_v51  ;;  %v127_v51 = vadd.f32 %v3848_v48, %v3835_v20 }
 0x46f   :  { %1624 = vmatpush.msra.mxu0 %v1599_v58  ;;  %v3849_v58 = vld [vmem:[#allocation49_spill] sm:$0xff] }
 0x471   :  { %1625 = vmatpush.msra.mxu0 %v1598_v19 }
 0x473   :  { %1626 = vmatpush.msra.mxu0 %v1597_v59 }
 0x475   :  { %1627 = vmatpush.msra.mxu0 %v1596_v56 }
 0x477   :  { %1628 = vmatpush.msra.mxu0 %v1595_v42 }
 0x479   :  { %1629 = vmatpush.msra.mxu0 %v1594_v57 }
 0x4d6   :  { %v1300_v27 = vpop.f32.mrf.mxu0  ;;  %v1320_v34 = vpop.f32.mrf.mxu1 }
 0x4d7   :  { %v1363_v32 = vadd.f32 %v1300_v27, %v124_v0  ;;  %v1364_v41 = vadd.f32 %v1320_v34, %v3841_v38 }
 0x4d9   :  { %v1717_v50 = vmul.f32 -1.442695, %v1363_v32  ;;  %v1718_v53 = vmul.f32 -1.442695, %v1364_v41 }
 0x4db   :  { %1830 = vpow2.f32 %v1717_v50  ;;  %v3845_v50 = vld [vmem:[#allocation6_spill] sm:$0xff] }
 0x4dc   :  { %1832 = vpow2.f32 %v1718_v53  ;;  %v3846_v53 = vld [vmem:[#allocation15_spill] sm:$0xff] }
 0x4dd   :  { %v1360_v23 = vpop.f32.mrf.mxu3  ;;  %v1340_v37 = vpop.f32.mrf.mxu2 }
 0x4de   :  { %v1366_v47 = vadd.f32 %v1360_v23, %v3842_v49  ;;  %v1365_v60 = vadd.f32 %v1340_v37, %v3843_v46 }
 0x4e0   :  { %v1719_v35 = vmul.f32 -1.442695, %v1366_v47 }
 0x4e1   :  { %v1831_v6 = vpop.eup %1830 }
 0x4e2   :  { %v1833_v3 = vpop.eup %1832  ;;  %v1373_v7 = vadd.f32 1.0, %v1831_v6  ;;  %1834 = vpow2.f32 %v1719_v35 }
 0x4e3   :  { %v1374_v13 = vadd.f32 1.0, %v1833_v3  ;;  %v3512_v3 = vld [vmem:[%s3556_s7] ss:$0 sm:$0xff] }
 0x4e4   :  { %1836 = vrcp.f32 %v1373_v7  ;;  %v1386_v4 = vand.u32 2147483648, %v1373_v7  ;;  %v1384_v5 = vand.u32 2147483647, %v1373_v7  ;;  %vm1380_vm11 = vweird.f32 %v1373_v7 }
 0x4e5   :  { %1838 = vrcp.f32 %v1374_v13  ;;  %v1401_v63 = vand.u32 2147483648, %v1374_v13  ;;  %v1399_v16 = vand.u32 2147483647, %v1374_v13  ;;  %vm1395_vm12 = vweird.f32 %v1374_v13 }
 0x4e6   :  { %v1387_v25 = vor.u32 1.1754944e-38, %v1386_v4  ;;  %vm1385_vm15 = vcmp.eq.f32.partialorder %v1384_v5, 8.507059e+37 }
 0x4e7   :  { %v1402_v12 = vor.u32 1.1754944e-38, %v1401_v63  ;;  %vm1400_vm0 = vcmp.eq.f32.partialorder %v1399_v16, 8.507059e+37 }
 0x4e8   :  { %v1835_v61 = vpop.eup %1834 }
 0x4e9   :  { %v1409_v52 = vadd.f32 1.0, %v1835_v61 }
 0x4ea   :  { %v1837_v22 = vpop.eup %1836 }
 0x4eb   :  { %v1839_v2 = vpop.eup %1838  ;;  %v1376_v1 = vmul.f32 %v1837_v22, %v1373_v7  ;;  %1840 = vrcp.f32 %v1409_v52  ;;  %vm1381_vm9 = vweird.f32 %v1837_v22  ;;  %v1421_v27 = vand.u32 2147483648, %v1409_v52 }
 0x4ec   :  { %v1391_v54 = vmul.f32 %v1839_v2, %v1374_v13  ;;  %1842 = vtanh.f32 %v1365_v60  ;;  %vm1396_vm10 = vweird.f32 %v1839_v2  ;;  %vm1382_vm13 = vmor %vm1380_vm11, %vm1381_vm9  ;;  %vm1415_vm2 = vweird.f32 %v1409_v52 }
 0x4ed   :  { %v1377_v15 = vsub.f32 1.0, %v1376_v1  ;;  %vm1397_vm14 = vmor %vm1395_vm12, %vm1396_vm10  ;;  %v1419_v34 = vand.u32 2147483647, %v1409_v52  ;;  %v1422_v32 = vor.u32 1.1754944e-38, %v1421_v27  ;;  %v3851_v1 = vld [vmem:[#allocation48_spill] sm:$0xff] }
 0x4ee   :  { %v1392_v9 = vsub.f32 1.0, %v1391_v54 }
 0x4ef   :  { %v1378_v62 = vmul.f32 %v1837_v22, %v1377_v15  ;;  %vm1420_vm4 = vcmp.eq.f32.partialorder %v1419_v34, 8.507059e+37 }
 0x4f0   :  { %v1393_v8 = vmul.f32 %v1839_v2, %v1392_v9 }
 0x4f1   :  { %v1841_v10 = vpop.eup %1840  ;;  %v1379_v24 = vadd.f32 %v1837_v22, %v1378_v62 }
 0x4f2   :  { %v1394_v26 = vadd.f32 %v1839_v2, %v1393_v8  ;;  %v1411_v28 = vmul.f32 %v1841_v10, %v1409_v52  ;;  %v1843_v30 = vpop.eup %1842  ;;  %vm1416_vm1 = vweird.f32 %v1841_v10 }
 0x4f3   :  { %v1383_v29 = vsel %vm1382_vm13, %v1837_v22, %v1379_v24  ;;  %vm1417_vm3 = vmor %vm1415_vm2, %vm1416_vm1 }
 0x4f4   :  { %v1388_v17 = vsel %vm1385_vm15, %v1387_v25, %v1383_v29  ;;  %v1398_v33 = vsel %vm1397_vm14, %v1839_v2, %v1394_v26  ;;  %v1412_v55 = vsub.f32 1.0, %v1411_v28 }
 0x4f5   :  { %v1403_v18 = vsel %vm1400_vm0, %v1402_v12, %v1398_v33  ;;  %v1426_v39 = vmul.f32 %v1843_v30, %v1388_v17 }
 0x4f6   :  { %v1425_v40 = vmul.f32 %v1403_v18, %v3434_v11  ;;  %v1413_v43 = vmul.f32 %v1841_v10, %v1412_v55  ;;  %v3844_v11 = vld [vmem:[#allocation54_spill] sm:$0xff] }
 0x4f8   :  { %v3497_v44 = vadd.f32 %v1426_v39, %v1425_v40  ;;  %v1414_v0 = vadd.f32 %v1841_v10, %v1413_v43 }
 0x4fa   :  { %1844 = vtanh.f32 %v3497_v44  ;;  %v1418_v31 = vsel %vm1417_vm3, %v1841_v10, %v1414_v0 }
 0x4fb   :  { %v1423_v41 = vsel %vm1420_vm4, %v1422_v32, %v1418_v31 }
 0x500   :  { %v1845_v38 = vpop.eup %1844 }
 0x501   :  { %v1429_v45 = vmul.f32 %v1845_v38, %v1423_v41 }
 0x503   :  { %1453 = vmatmul.f32.vlgmr.msrb.gmra.mxu0 %v1429_v45  ;;  %1473 = vmatmul.f32.vlgmr.msrb.gmra.mxu1 %v1429_v45 }
 0x504   :  { %1493 = vmatmul.f32.vlgmr.msrb.gmra.mxu2 %v1429_v45  ;;  %1513 = vmatmul.f32.vlgmr.msrb.gmra.mxu3 %v1429_v45 }
 0x50b   :  { %1630 = vmatmul.f32.vlgmr.msra.gmra.mxu0 %v3844_v11 }
 0x513   :  { %1633 = vmatmul.f32.gmra.mxu0 %v3845_v50 }
 0x51b   :  { %1636 = vmatmul.f32.gmra.mxu0 %v3846_v53 }
 0x523   :  { %1639 = vmatmul.f32.gmra.mxu0 %v3847_v21 }
 0x52b   :  { %1642 = vmatmul.f32.gmra.mxu0 %v3358_v14 }
 0x533   :  { %1645 = vmatmul.f32.gmra.mxu0 %v3437_v36  ;;  %v3850_v36 = vld [vmem:[#allocation53_spill] sm:$0xff] }
 0x53b   :  { %1648 = vmatmul.f32.gmra.mxu0 %v1429_v45 }
 0x580   :  { %v1454_v23 = vpop.f32.mrf.mxu0  ;;  %v1474_v49 = vpop.f32.mrf.mxu1 }
 0x581   :  { %v1517_v47 = vadd.f32 %v1454_v23, %v127_v51  ;;  %v1518_v35 = vadd.f32 %v1474_v49, %v3849_v58 }
 0x583   :  { %v1720_v19 = vmul.f32 -1.442695, %v1517_v47  ;;  %v1721_v6 = vmul.f32 -1.442695, %v1518_v35 }
 0x585   :  { %1846 = vpow2.f32 %v1720_v19 }
 0x586   :  { %1848 = vpow2.f32 %v1721_v6 }
 0x587   :  { %v1514_v14 = vpop.f32.mrf.mxu3  ;;  %v1494_v52 = vpop.f32.mrf.mxu2 }
 0x588   :  { %v1520_v7 = vadd.f32 %v1514_v14, %v3850_v36  ;;  %v1631_v13 = vpop.f32.mrf.mxu0  ;;  %v1519_v54 = vadd.f32 %v1494_v52, %v3851_v1 }
 0x589   :  { %v1632_v20 = vadd.f32 %v3512_v3, %v1631_v13 }
 0x58a   :  { %v1722_v59 = vmul.f32 -1.442695, %v1520_v7 }
 0x58b   :  { %v1847_v56 = vpop.eup %1846  ;;  %1655 = vst [vmem:[%s3557_s8] sm:$0xff] %v1632_v20 }
 0x58c   :  { %v1849_v42 = vpop.eup %1848  ;;  %v1527_v37 = vadd.f32 1.0, %v1847_v56  ;;  %1850 = vpow2.f32 %v1722_v59 }
 0x58d   :  { %v1528_v61 = vadd.f32 1.0, %v1849_v42 }
 0x58e   :  { %1852 = vrcp.f32 %v1527_v37  ;;  %v1538_v5 = vand.u32 2147483647, %v1527_v37  ;;  %v1540_v8 = vand.u32 2147483648, %v1527_v37  ;;  %vm1534_vm7 = vweird.f32 %v1527_v37 }
 0x58f   :  { %1854 = vrcp.f32 %v1528_v61  ;;  %v1555_v10 = vand.u32 2147483648, %v1528_v61  ;;  %v1553_v28 = vand.u32 2147483647, %v1528_v61  ;;  %vm1549_vm8 = vweird.f32 %v1528_v61 }
 0x590   :  { %v1634_v57 = vpop.f32.mrf.mxu0  ;;  %v1541_v30 = vor.u32 1.1754944e-38, %v1540_v8  ;;  %vm1539_vm10 = vcmp.eq.f32.partialorder %v1538_v5, 8.507059e+37 }
 0x591   :  { %v1635_v22 = vadd.f32 %v3512_v3, %v1634_v57  ;;  %v1556_v55 = vor.u32 1.1754944e-38, %v1555_v10  ;;  %vm1554_vm12 = vcmp.eq.f32.partialorder %v1553_v28, 8.507059e+37 }
 0x592   :  { %v1851_v46 = vpop.eup %1850 }
 0x593   :  { %v1563_v60 = vadd.f32 1.0, %v1851_v46  ;;  %1656 = vst [vmem:[%s3557_s8 + $0x8] sm:$0xff] %v1635_v22 }
 0x594   :  { %v1853_v2 = vpop.eup %1852 }
 0x595   :  { %v1855_v15 = vpop.eup %1854  ;;  %v1530_v9 = vmul.f32 %v1853_v2, %v1527_v37  ;;  %1856 = vrcp.f32 %v1563_v60  ;;  %vm1535_vm5 = vweird.f32 %v1853_v2  ;;  %v1575_v50 = vand.u32 2147483648, %v1563_v60 }
 0x596   :  { %v1545_v4 = vmul.f32 %v1855_v15, %v1528_v61  ;;  %1858 = vtanh.f32 %v1519_v54  ;;  %vm1550_vm6 = vweird.f32 %v1855_v15  ;;  %vm1536_vm9 = vmor %vm1534_vm7, %vm1535_vm5  ;;  %vm1569_vm14 = vweird.f32 %v1563_v60 }
 0x597   :  { %v1531_v63 = vsub.f32 1.0, %v1530_v9  ;;  %vm1551_vm11 = vmor %vm1549_vm8, %vm1550_vm6  ;;  %v1573_v53 = vand.u32 2147483647, %v1563_v60  ;;  %v1576_v51 = vor.u32 1.1754944e-38, %v1575_v50 }
 0x598   :  { %v1546_v62 = vsub.f32 1.0, %v1545_v4  ;;  %v1637_v16 = vpop.f32.mrf.mxu0 }
 0x599   :  { %v1532_v24 = vmul.f32 %v1853_v2, %v1531_v63  ;;  %v1638_v25 = vadd.f32 %v3512_v3, %v1637_v16  ;;  %vm1574_vm0 = vcmp.eq.f32.partialorder %v1573_v53, 8.507059e+37 }
 0x59a   :  { %v1547_v26 = vmul.f32 %v1855_v15, %v1546_v62 }
 0x59b   :  { %v1857_v12 = vpop.eup %1856  ;;  %v1533_v29 = vadd.f32 %v1853_v2, %v1532_v24  ;;  %1657 = vst [vmem:[%s3557_s8 + $0x10] sm:$0xff] %v1638_v25 }
 0x59c   :  { %v1548_v17 = vadd.f32 %v1855_v15, %v1547_v26  ;;  %v1565_v33 = vmul.f32 %v1857_v12, %v1563_v60  ;;  %v1859_v39 = vpop.eup %1858  ;;  %vm1570_vm13 = vweird.f32 %v1857_v12 }
 0x59d   :  { %v1537_v18 = vsel %vm1536_vm9, %v1853_v2, %v1533_v29  ;;  %vm1571_vm15 = vmor %vm1569_vm14, %vm1570_vm13 }
 0x59e   :  { %v1542_v40 = vsel %vm1539_vm10, %v1541_v30, %v1537_v18  ;;  %v1552_v43 = vsel %vm1551_vm11, %v1855_v15, %v1548_v17  ;;  %v1566_v0 = vsub.f32 1.0, %v1565_v33 }
 0x59f   :  { %v1580_v27 = vmul.f32 %v1859_v39, %v1542_v40  ;;  %v1557_v34 = vsel %vm1554_vm12, %v1556_v55, %v1552_v43 }
 0x5a0   :  { %v1640_v31 = vpop.f32.mrf.mxu0  ;;  %v1567_v32 = vmul.f32 %v1857_v12, %v1566_v0  ;;  %v1579_v38 = vmul.f32 %v1557_v34, %v3497_v44 }
 0x5a1   :  { %v1641_v41 = vadd.f32 %v3512_v3, %v1640_v31 }
 0x5a2   :  { %v1581_v45 = vadd.f32 %v1580_v27, %v1579_v38  ;;  %v1568_v11 = vadd.f32 %v1857_v12, %v1567_v32 }
 0x5a3   :  { %1658 = vst [vmem:[%s3557_s8 + $0x18] sm:$0xff] %v1641_v41 }
 0x5a4   :  { %1860 = vtanh.f32 %v1581_v45  ;;  %v1572_v21 = vsel %vm1571_vm15, %v1857_v12, %v1568_v11 }
 0x5a5   :  { %v1577_v49 = vsel %vm1574_vm0, %v1576_v51, %v1572_v21 }
 0x5a8   :  { %v1643_v48 = vpop.f32.mrf.mxu0 }
 0x5a9   :  { %v1644_v23 = vadd.f32 %v3512_v3, %v1643_v48 }
 0x5aa   :  { %v1861_v44 = vpop.eup %1860 }
 0x5ab   :  { %1659 = vst [vmem:[%s3557_s8 + $0x20] sm:$0xff] %v1644_v23  ;;  %v1583_v47 = vmul.f32 %v1861_v44, %v1577_v49 }
 0x5ad   :  { %1651 = vmatmul.f32.gmra.mxu0 %v1583_v47 }
 0x5b0   :  { %v1646_v58 = vpop.f32.mrf.mxu0 }
 0x5b1   :  { %v1647_v35 = vadd.f32 %v3512_v3, %v1646_v58 }
 0x5b3   :  { %1660 = vst [vmem:[%s3557_s8 + $0x28] sm:$0xff] %v1647_v35 }
 0x5b8   :  { %v1649_v19 = vpop.f32.mrf.mxu0 }
 0x5b9   :  { %v1650_v6 = vadd.f32 %v3512_v3, %v1649_v19 }
 0x5bb   :  { %1661 = vst [vmem:[%s3557_s8 + $0x30] sm:$0xff] %v1650_v6 }
 0x62a   :  { %v1652_v14 = vpop.f32.mrf.mxu0 }
 0x62b   :  { %v1653_v36 = vadd.f32 %v3512_v3, %v1652_v14 }
 0x62d   :  { %1662 = vst [vmem:[%s3557_s8 + $0x38] sm:$0xff] %v1653_v36 }

</bundles_post_ra>
